<compile_context>
chip_gen: v7x
topology: tpu7x:2x2x1
jax: 0.10.0
libtpu: 0.0.40
codegen_flags: <defaults>
</compile_context>

<pallas_src>
import functools
import math

import jax
import jax.numpy as jnp
from jax.experimental import pallas as pl
from jax.experimental.pallas import tpu as pltpu


def fused_decode_kernel(emb_ref, h0_ref, encwc_ref, w_ref, b_ref, wo_ref, bo_ref,
                        out_ref, y1_sc, *, H, V, L, T):
    f32 = jnp.float32
    OW = out_ref.shape[-1]        # lane-dense output slab width (multiple of 128)

    # ---- batched (M=T) embedded-LHS matmul, hoisted off the serial chain ----
    #   y1 = emb @ [wa_e | wc_e] + [ba | bc]
    y1_sc[...] = (jnp.dot(emb_ref[...], w_ref[0], preferred_element_type=f32)
                  + b_ref[0])

    enc_wc = encwc_ref[...]        # (L, H) = encoder_outputs @ wc_a (precomputed)
    w_hid = w_ref[1]               # [wa_h | whr | whz | whn]
    b_hid = b_ref[1]               # [0    | bir+bhr | biz+bhz | bhn]
    w_x = w_ref[2]                 # [wir  | wiz | win]
    b_x = b_ref[2]                 # [0    | 0   | bin]

    # Loop-invariant iotas (hoisted; used to scatter per-step rows into (T, ·)).
    row_h = jax.lax.broadcasted_iota(jnp.int32, (T, H), 0)
    row_a = jax.lax.broadcasted_iota(jnp.int32, (T, L), 0)
    h_all = jnp.zeros((T, H), f32)
    attn_all = jnp.zeros((T, L), f32)

    hid = h0_ref[...]              # (1, H) carried hidden state

    # Statically unrolled decode loop (T is a compile-time constant).
    for t in range(T):
        y1_t = y1_sc[pl.ds(t, 1), :]                                     # (1, PW)
        # y2 = hid @ [wa_h | whr | whz | whn] + [0 | bir+bhr | biz+bhz | bhn]
        y2 = jnp.dot(hid, w_hid, preferred_element_type=f32) + b_hid     # (1, PW)

        # attn_weights = softmax(attn(cat(embedded[0], hidden[0], dim=1)), dim=1)
        al = y1_t[:, :L] + y2[:, :L]                                     # (1, L)
        m = jnp.max(al, axis=1, keepdims=True)
        e = jnp.exp(al - m)
        attn_w = e / jnp.sum(e, axis=1, keepdims=True)    # exact divide (emitted)

        # relu(attn_combine(cat(embedded, attn_applied)));
        # attn_applied @ wc_a == (attn_w @ enc) @ wc_a == attn_w @ enc_wc
        comb = y1_t[:, L:L + H] + jnp.dot(attn_w, enc_wc,
                                          preferred_element_type=f32)    # (1, H)
        x = jnp.maximum(comb, 0.0)

        # y3 = x @ [wir | wiz | win] + [0 | 0 | bin]
        y3 = jnp.dot(x, w_x, preferred_element_type=f32) + b_x           # (1, PW)

        # single-step GRU, PyTorch gate order (r, z, n); sigmoid/tanh on EUP.
        r = jax.nn.sigmoid(y3[:, :H] + y2[:, L:L + H])
        z = jax.nn.sigmoid(y3[:, H:2 * H] + y2[:, L + H:L + 2 * H])
        n = jnp.tanh(y3[:, 2 * H:3 * H] + r * y2[:, L + 2 * H:L + 3 * H])
        hid = (1.0 - z) * n + z * hid

        # Collect per-step rows (row-select; no per-step output DMAs).
        h_all = jnp.where(row_h == t, hid, h_all)
        attn_all = jnp.where(row_a == t, attn_w, attn_all)

    # ---- deferred, batched (M=T) output projection + log_softmax ------------
    logits = (jnp.dot(h_all, wo_ref[...], preferred_element_type=f32)
              + bo_ref[...])                                             # (T, OW)
    mo = jnp.max(logits, axis=1, keepdims=True)        # pad lanes carry -1e30 bias
    sh = logits - mo
    lse = jnp.log(jnp.sum(jnp.exp(sh), axis=1, keepdims=True))
    logp = sh - lse                                                      # (T, OW)

    # ---- assemble the lane-dense output slab: [logp | hseq | attnw | 0] -----
    lane = jax.lax.broadcasted_iota(jnp.int32, (T, OW), 1)
    slab = jnp.where(lane < V, logp, 0.0)
    # Exact one-hot placement matmuls put h/attn at lane offsets V / V+H
    # (avoids any unaligned lane concatenation in-kernel).
    ph = (jax.lax.broadcasted_iota(jnp.int32, (H, OW), 1)
          == jax.lax.broadcasted_iota(jnp.int32, (H, OW), 0) + V).astype(f32)
    pa = (jax.lax.broadcasted_iota(jnp.int32, (L, OW), 1)
          == jax.lax.broadcasted_iota(jnp.int32, (L, OW), 0) + (V + H)).astype(f32)
    slab = (slab
            + jnp.dot(h_all, ph, preferred_element_type=f32)
            + jnp.dot(attn_all, pa, preferred_element_type=f32))
    out_ref[...] = slab            # one unmasked (T, 128) store


def init_params(key, hidden_size, output_size, max_length):
    """Deterministic parameter init (uniform +-1/sqrt(fan_in), like PyTorch)."""
    H, V, L = hidden_size, output_size, max_length
    ks = list(jax.random.split(key, 24))
    k = iter(ks)

    def lin(kk, fan_in, shape):
        b = 1.0 / math.sqrt(fan_in)
        return jax.random.uniform(kk, shape, jnp.float32, -b, b)

    p = {
        "hidden_size": H, "output_size": V, "max_length": L,
        "embedding": jax.random.normal(next(k), (V, H), jnp.float32),
        # attn: Linear(2H -> L); transposed and split into emb/hid halves
        "wa_e": lin(next(k), 2 * H, (H, L)), "wa_h": lin(next(k), 2 * H, (H, L)),
        "ba": lin(next(k), 2 * H, (1, L)),
        # attn_combine: Linear(2H -> H)
        "wc_e": lin(next(k), 2 * H, (H, H)), "wc_a": lin(next(k), 2 * H, (H, H)),
        "bc": lin(next(k), 2 * H, (1, H)),
        # GRU(H, H): weight_ih / weight_hh split into r, z, n gates (transposed)
        "wir": lin(next(k), H, (H, H)), "wiz": lin(next(k), H, (H, H)),
        "win": lin(next(k), H, (H, H)),
        "whr": lin(next(k), H, (H, H)), "whz": lin(next(k), H, (H, H)),
        "whn": lin(next(k), H, (H, H)),
        "bir": lin(next(k), H, (1, H)), "biz": lin(next(k), H, (1, H)),
        "bin": lin(next(k), H, (1, H)),
        "bhr": lin(next(k), H, (1, H)), "bhz": lin(next(k), H, (1, H)),
        "bhn": lin(next(k), H, (1, H)),
        # out: Linear(H -> V)
        "wo": lin(next(k), H, (H, V)), "bo": lin(next(k), H, (1, V)),
    }
    return p


def pack_params(params):
    """Pack weights into lane-dense VMEM-resident slabs (grouped by LHS)."""
    H = params["hidden_size"]
    V = params["output_size"]
    L = params["max_length"]
    widths = (L + H, L + 3 * H, 3 * H)
    PW = 128 * pl.cdiv(max(widths), 128)     # packed-weight slab width
    OW = 128 * pl.cdiv(V + H + L, 128)       # lane-dense output slab width
    # TODO(synk): for large H/V, pack per-group widths instead of one PW and
    # consider bf16 weight storage (v6e/v7x VMEM/footprint note from review).

    def slab(*mats):
        w = jnp.concatenate(mats, axis=1)
        return jnp.pad(w, ((0, 0), (0, PW - w.shape[1])))

    zL = jnp.zeros((1, L), jnp.float32)
    zH = jnp.zeros((1, H), jnp.float32)

    wpack = jnp.stack([
        slab(params["wa_e"], params["wc_e"]),                                # LHS: embedded (batched)
        slab(params["wa_h"], params["whr"], params["whz"], params["whn"]),   # LHS: hidden
        slab(params["wir"], params["wiz"], params["win"]),                   # LHS: x
    ])                                                                       # (3, H, PW)
    bpack = jnp.stack([
        slab(params["ba"], params["bc"]),
        slab(zL, params["bir"] + params["bhr"],
             params["biz"] + params["bhz"], params["bhn"]),                  # pre-summed gate biases
        slab(zH, zH, params["bin"]),
    ])                                                                       # (3, 1, PW)

    # Output projection padded to the slab width; padded bias lanes are a large
    # negative so they never win the log_softmax max nor contribute to the lse.
    wo_pad = jnp.pad(params["wo"], ((0, 0), (0, OW - V)))                    # (H, OW)
    bo_pad = jnp.concatenate(
        [params["bo"], jnp.full((1, OW - V), -1e30, jnp.float32)], axis=1)   # (1, OW)

    return {
        "hidden_size": H, "output_size": V, "max_length": L,
        "pack_width": int(PW), "out_width": int(OW),
        "embedding": params["embedding"], "wc_a": params["wc_a"],
        "wpack": wpack, "bpack": bpack, "wo_pad": wo_pad, "bo_pad": bo_pad,
    }


def attn_decoder_decode(packed, tokens, hidden0, encoder_outputs):
    """Fused teacher-forced decode: T decoder steps in ONE (grid-less) pallas_call."""
    H = packed["hidden_size"]
    V = packed["output_size"]
    L = packed["max_length"]
    PW = packed["pack_width"]
    OW = packed["out_width"]
    tokens = jnp.reshape(tokens, (-1,)).astype(jnp.int32)
    T = int(tokens.shape[0])

    # One embedding gather for the whole token sequence.
    # TODO(synk): nn.Dropout(p=0.1) on the embedding is treated as identity
    # (eval mode); training dropout would use pltpu.prng_seed/prng_random_bits.
    emb_seq = packed["embedding"][tokens].reshape(T, H)
    h0 = hidden0.reshape(1, H)
    # enc @ wc_a is constant across steps -> hoisted off the per-step chain.
    enc_wc = jnp.dot(encoder_outputs, packed["wc_a"],
                     preferred_element_type=jnp.float32)                 # (L, H)

    kernel = functools.partial(fused_decode_kernel, H=H, V=V, L=L, T=T)
    vmem = pl.BlockSpec(memory_space=pltpu.MemorySpace.VMEM)

    cost = pl.CostEstimate(
        flops=2 * T * (3 * H * PW + L * H + H * OW + (H + L) * OW),
        transcendentals=T * (L + 4 * H + OW),
        bytes_accessed=4 * (packed["wpack"].size + packed["bpack"].size
                            + packed["wo_pad"].size + packed["bo_pad"].size
                            + enc_wc.size + emb_seq.size + h0.size + T * OW),
    )

    # TODO(synk): for batched multi-sequence decode, add a leading 'parallel'
    # grid axis over sequences so v7x's second TensorCore gets useful work.
    slab = pl.pallas_call(
        kernel,
        out_shape=jax.ShapeDtypeStruct((T, OW), jnp.float32),
        in_specs=[vmem] * 7,
        out_specs=vmem,
        scratch_shapes=[pltpu.VMEM((T, PW), jnp.float32)],   # batched y1 rows
        cost_estimate=cost,
    )(emb_seq, h0, enc_wc, packed["wpack"], packed["bpack"],
      packed["wo_pad"], packed["bo_pad"])

    logp = slab[:, :V]
    hseq = slab[:, V:V + H]
    attnw = slab[:, V + H:V + H + L]
    return logp, hseq, attnw


def attn_decoder_forward(packed, input_token, hidden, encoder_outputs):
    """Single decoder step with the original PyTorch return shapes."""
    H = packed["hidden_size"]
    logp, hseq, attnw = attn_decoder_decode(
        packed, jnp.reshape(input_token, (1,)), hidden, encoder_outputs)
    return logp, hseq.reshape(1, 1, H), attnw


# ----------------------- pure-JAX reference (sanity) ------------------------

def reference_step(params, token, hidden, enc):
    H = params["hidden_size"]
    emb = params["embedding"][jnp.reshape(token, ())].reshape(1, H)
    hid = hidden.reshape(1, H)
    al = emb @ params["wa_e"] + hid @ params["wa_h"] + params["ba"]
    aw = jax.nn.softmax(al, axis=1)
    ap = aw @ enc
    x = jax.nn.relu(emb @ params["wc_e"] + ap @ params["wc_a"] + params["bc"])
    r = jax.nn.sigmoid(x @ params["wir"] + params["bir"] + hid @ params["whr"] + params["bhr"])
    z = jax.nn.sigmoid(x @ params["wiz"] + params["biz"] + hid @ params["whz"] + params["bhz"])
    n = jnp.tanh(x @ params["win"] + params["bin"] + r * (hid @ params["whn"] + params["bhn"]))
    h_new = (1.0 - z) * n + z * hid
    logits = h_new @ params["wo"] + params["bo"]
    return jax.nn.log_softmax(logits, axis=1), h_new, aw


def reference_decode(params, tokens, hidden0, enc):
    hid = hidden0.reshape(1, params["hidden_size"])
    lps, hs, aws = [], [], []
    for t in range(int(tokens.shape[0])):
        lp, hid, aw = reference_step(params, tokens[t], hid, enc)
        lps.append(lp); hs.append(hid); aws.append(aw)
    return jnp.concatenate(lps, 0), jnp.concatenate(hs, 0), jnp.concatenate(aws, 0)


if __name__ == "__main__":
    HIDDEN = 32       # hidden_size
    VOCAB = 40        # output_size
    MAXLEN = 16       # max_length
    T = 8             # decoded (teacher-forced) tokens per fused call

    key = jax.random.PRNGKey(0)
    kp, kh, ke, kt = jax.random.split(key, 4)

    params = init_params(kp, HIDDEN, VOCAB, MAXLEN)
    packed = pack_params(params)

    tokens = jax.random.randint(kt, (T,), 0, VOCAB, dtype=jnp.int32)
    hidden0 = jax.random.normal(kh, (1, 1, HIDDEN), jnp.float32)
    encoder_outputs = jax.random.normal(ke, (MAXLEN, HIDDEN), jnp.float32)

    # Fused multi-step decode: one grid-less pallas_call for all T steps.
    logp_seq, h_seq, attn_seq = attn_decoder_decode(packed, tokens, hidden0, encoder_outputs)
    jax.block_until_ready((logp_seq, h_seq, attn_seq))

    r_logp, r_h, r_aw = reference_decode(params, tokens, hidden0, encoder_outputs)
    assert logp_seq.shape == (T, VOCAB) and h_seq.shape == (T, HIDDEN) and attn_seq.shape == (T, MAXLEN)
    assert jnp.allclose(logp_seq, r_logp, atol=2e-3, rtol=2e-3)
    assert jnp.allclose(h_seq, r_h, atol=2e-3, rtol=2e-3)
    assert jnp.allclose(attn_seq, r_aw, atol=2e-3, rtol=2e-3)

    # Single-step API (original PyTorch forward signature / return shapes).
    logp1, h1, aw1 = attn_decoder_forward(packed, jnp.array([[3]], jnp.int32),
                                          hidden0, encoder_outputs)
    jax.block_until_ready((logp1, h1, aw1))
    s_logp, s_h, s_aw = reference_step(params, jnp.int32(3), hidden0, encoder_outputs)
    assert logp1.shape == (1, VOCAB) and h1.shape == (1, 1, HIDDEN) and aw1.shape == (1, MAXLEN)
    assert jnp.allclose(logp1, s_logp, atol=2e-3, rtol=2e-3)
    assert jnp.allclose(h1, s_h.reshape(1, 1, HIDDEN), atol=2e-3, rtol=2e-3)
    assert jnp.allclose(aw1, s_aw, atol=2e-3, rtol=2e-3)

    print("KERNEL_OK")
</pallas_src>

<mosaic_0001>
module attributes {stable_mosaic.version = 11 : i64} {
  func.func @fused_decode_kernel(%arg0: memref<8x32xf32, #tpu.memory_space<vmem>>, %arg1: memref<1x32xf32, #tpu.memory_space<vmem>>, %arg2: memref<16x32xf32, #tpu.memory_space<vmem>>, %arg3: memref<3x32x128xf32, #tpu.memory_space<vmem>>, %arg4: memref<3x1x128xf32, #tpu.memory_space<vmem>>, %arg5: memref<32x128xf32, #tpu.memory_space<vmem>>, %arg6: memref<1x128xf32, #tpu.memory_space<vmem>>, %arg7: memref<8x128xf32, #tpu.memory_space<vmem>>, %arg8: memref<8x128xf32, #tpu.memory_space<vmem>>) attributes {dimension_semantics = [], scalar_prefetch = 0 : i64, scratch_operands = 1 : i64, tpu.core_type = #tpu.core_type<tc>} {
    %c0 = arith.constant 0 : index
    %c0_0 = arith.constant 0 : index
    %0 = vector.load %arg0[%c0, %c0_0] : memref<8x32xf32, #tpu.memory_space<vmem>>, vector<8x32xf32>
    %c0_1 = arith.constant 0 : index
    %c0_2 = arith.constant 0 : index
    %c0_3 = arith.constant 0 : index
    %1 = vector.load %arg3[%c0_1, %c0_2, %c0_3] : memref<3x32x128xf32, #tpu.memory_space<vmem>>, vector<1x32x128xf32>
    %2 = vector.shape_cast %1 : vector<1x32x128xf32> to vector<32x128xf32>
    %cst = arith.constant dense<0.000000e+00> : vector<8x128xf32>
    %3 = tpu.matmul %0, %2, %cst {dimension_numbers = #tpu.dot_dimension_numbers<[1], [0], [0], [1], [0, 0, 1, 1], [], []>} : vector<8x32xf32>, vector<32x128xf32>, vector<8x128xf32> -> vector<8x128xf32>
    %c0_4 = arith.constant 0 : index
    %c0_5 = arith.constant 0 : index
    %c0_6 = arith.constant 0 : index
    %4 = vector.load %arg4[%c0_4, %c0_5, %c0_6] : memref<3x1x128xf32, #tpu.memory_space<vmem>>, vector<1x1x128xf32>
    %5 = vector.shape_cast %4 : vector<1x1x128xf32> to vector<1x128xf32>
    %6 = vector.broadcast %5 : vector<1x128xf32> to vector<8x128xf32>
    %7 = arith.addf %3, %6 : vector<8x128xf32>
    %c0_7 = arith.constant 0 : index
    %c0_8 = arith.constant 0 : index
    %8 = vector.load %arg8[%c0_7, %c0_8] : memref<8x128xf32, #tpu.memory_space<vmem>>, vector<8x128xf32>
    tpu.vector_store %arg8[%c0_7, %c0_8], %7 {strides = array<i32>} : memref<8x128xf32, #tpu.memory_space<vmem>>, vector<8x128xf32>,
    %c0_9 = arith.constant 0 : index
    %c0_10 = arith.constant 0 : index
    %9 = vector.load %arg2[%c0_9, %c0_10] : memref<16x32xf32, #tpu.memory_space<vmem>>, vector<16x32xf32>
    %c1 = arith.constant 1 : index
    %c0_11 = arith.constant 0 : index
    %c0_12 = arith.constant 0 : index
    %10 = vector.load %arg3[%c1, %c0_11, %c0_12] : memref<3x32x128xf32, #tpu.memory_space<vmem>>, vector<1x32x128xf32>
    %11 = vector.shape_cast %10 : vector<1x32x128xf32> to vector<32x128xf32>
    %c1_13 = arith.constant 1 : index
    %c0_14 = arith.constant 0 : index
    %c0_15 = arith.constant 0 : index
    %12 = vector.load %arg4[%c1_13, %c0_14, %c0_15] : memref<3x1x128xf32, #tpu.memory_space<vmem>>, vector<1x1x128xf32>
    %13 = vector.shape_cast %12 : vector<1x1x128xf32> to vector<1x128xf32>
    %c2 = arith.constant 2 : index
    %c0_16 = arith.constant 0 : index
    %c0_17 = arith.constant 0 : index
    %14 = vector.load %arg3[%c2, %c0_16, %c0_17] : memref<3x32x128xf32, #tpu.memory_space<vmem>>, vector<1x32x128xf32>
    %15 = vector.shape_cast %14 : vector<1x32x128xf32> to vector<32x128xf32>
    %c2_18 = arith.constant 2 : index
    %c0_19 = arith.constant 0 : index
    %c0_20 = arith.constant 0 : index
    %16 = vector.load %arg4[%c2_18, %c0_19, %c0_20] : memref<3x1x128xf32, #tpu.memory_space<vmem>>, vector<1x1x128xf32>
    %17 = vector.shape_cast %16 : vector<1x1x128xf32> to vector<1x128xf32>
    %18 = tpu.iota {dimensions = array<i32: 0>} : vector<8x32xi32>
    %19 = tpu.iota {dimensions = array<i32: 0>} : vector<8x16xi32>
    %cst_21 = arith.constant 0.000000e+00 : f32
    %20 = vector.broadcast %cst_21 : f32 to vector<8x32xf32>
    %cst_22 = arith.constant 0.000000e+00 : f32
    %21 = vector.broadcast %cst_22 : f32 to vector<8x16xf32>
    %c0_23 = arith.constant 0 : index
    %c0_24 = arith.constant 0 : index
    %22 = vector.load %arg1[%c0_23, %c0_24] : memref<1x32xf32, #tpu.memory_space<vmem>>, vector<1x32xf32>
    %c0_25 = arith.constant 0 : index
    %c0_26 = arith.constant 0 : index
    %23 = vector.load %arg8[%c0_25, %c0_26] : memref<8x128xf32, #tpu.memory_space<vmem>>, vector<1x128xf32>
    %cst_27 = arith.constant dense<0.000000e+00> : vector<1x128xf32>
    %24 = tpu.matmul %22, %11, %cst_27 {dimension_numbers = #tpu.dot_dimension_numbers<[1], [0], [0], [1], [0, 0, 1, 1], [], []>} : vector<1x32xf32>, vector<32x128xf32>, vector<1x128xf32> -> vector<1x128xf32>
    %25 = arith.addf %24, %13 : vector<1x128xf32>
    %26 = vector.extract_strided_slice %23 {offsets = [0, 0], sizes = [1, 16], strides = [1, 1]} : vector<1x128xf32> to vector<1x16xf32>
    %27 = vector.extract_strided_slice %25 {offsets = [0, 0], sizes = [1, 16], strides = [1, 1]} : vector<1x128xf32> to vector<1x16xf32>
    %28 = arith.addf %26, %27 : vector<1x16xf32>
    %cst_28 = arith.constant dense<0xFF800000> : vector<1xf32>
    %29 = vector.multi_reduction <maximumf>, %28, %cst_28 [1] : vector<1x16xf32> to vector<1xf32>
    %30 = vector.shape_cast %29 : vector<1xf32> to vector<1x1xf32>
    %31 = vector.broadcast %30 : vector<1x1xf32> to vector<1x16xf32>
    %32 = arith.subf %28, %31 : vector<1x16xf32>
    %33 = math.exp %32 : vector<1x16xf32>
    %cst_29 = arith.constant dense<0.000000e+00> : vector<1xf32>
    %34 = vector.multi_reduction <add>, %33, %cst_29 [1] : vector<1x16xf32> to vector<1xf32>
    %35 = vector.shape_cast %34 : vector<1xf32> to vector<1x1xf32>
    %36 = vector.broadcast %35 : vector<1x1xf32> to vector<1x16xf32>
    %37 = arith.divf %33, %36 : vector<1x16xf32>
    %38 = vector.extract_strided_slice %23 {offsets = [0, 16], sizes = [1, 32], strides = [1, 1]} : vector<1x128xf32> to vector<1x32xf32>
    %cst_30 = arith.constant dense<0.000000e+00> : vector<1x32xf32>
    %39 = tpu.matmul %37, %9, %cst_30 {dimension_numbers = #tpu.dot_dimension_numbers<[1], [0], [0], [1], [0, 0, 1, 1], [], []>} : vector<1x16xf32>, vector<16x32xf32>, vector<1x32xf32> -> vector<1x32xf32>
    %40 = arith.addf %38, %39 : vector<1x32xf32>
    %cst_31 = arith.constant 0.000000e+00 : f32
    %41 = vector.broadcast %cst_31 : f32 to vector<1x32xf32>
    %42 = arith.maximumf %40, %41 : vector<1x32xf32>
    %cst_32 = arith.constant dense<0.000000e+00> : vector<1x128xf32>
    %43 = tpu.matmul %42, %15, %cst_32 {dimension_numbers = #tpu.dot_dimension_numbers<[1], [0], [0], [1], [0, 0, 1, 1], [], []>} : vector<1x32xf32>, vector<32x128xf32>, vector<1x128xf32> -> vector<1x128xf32>
    %44 = arith.addf %43, %17 : vector<1x128xf32>
    %45 = vector.extract_strided_slice %44 {offsets = [0, 0], sizes = [1, 32], strides = [1, 1]} : vector<1x128xf32> to vector<1x32xf32>
    %46 = vector.extract_strided_slice %25 {offsets = [0, 16], sizes = [1, 32], strides = [1, 1]} : vector<1x128xf32> to vector<1x32xf32>
    %47 = arith.addf %45, %46 : vector<1x32xf32>
    %48 = arith.negf %47 : vector<1x32xf32>
    %49 = math.exp %48 : vector<1x32xf32>
    %cst_33 = arith.constant 1.000000e+00 : f32
    %50 = vector.broadcast %cst_33 : f32 to vector<1x32xf32>
    %51 = arith.addf %50, %49 : vector<1x32xf32>
    %52 = arith.divf %50, %51 : vector<1x32xf32>
    %53 = vector.extract_strided_slice %44 {offsets = [0, 32], sizes = [1, 32], strides = [1, 1]} : vector<1x128xf32> to vector<1x32xf32>
    %54 = vector.extract_strided_slice %25 {offsets = [0, 48], sizes = [1, 32], strides = [1, 1]} : vector<1x128xf32> to vector<1x32xf32>
    %55 = arith.addf %53, %54 : vector<1x32xf32>
    %56 = arith.negf %55 : vector<1x32xf32>
    %57 = math.exp %56 : vector<1x32xf32>
    %cst_34 = arith.constant 1.000000e+00 : f32
    %58 = vector.broadcast %cst_34 : f32 to vector<1x32xf32>
    %59 = arith.addf %58, %57 : vector<1x32xf32>
    %60 = arith.divf %58, %59 : vector<1x32xf32>
    %61 = vector.extract_strided_slice %44 {offsets = [0, 64], sizes = [1, 32], strides = [1, 1]} : vector<1x128xf32> to vector<1x32xf32>
    %62 = vector.extract_strided_slice %25 {offsets = [0, 80], sizes = [1, 32], strides = [1, 1]} : vector<1x128xf32> to vector<1x32xf32>
    %63 = arith.mulf %52, %62 : vector<1x32xf32>
    %64 = arith.addf %61, %63 : vector<1x32xf32>
    %65 = math.tanh %64 : vector<1x32xf32>
    %cst_35 = arith.constant 1.000000e+00 : f32
    %66 = vector.broadcast %cst_35 : f32 to vector<1x32xf32>
    %67 = arith.subf %66, %60 : vector<1x32xf32>
    %68 = arith.mulf %67, %65 : vector<1x32xf32>
    %69 = arith.mulf %60, %22 : vector<1x32xf32>
    %70 = arith.addf %68, %69 : vector<1x32xf32>
    %c0_i32 = arith.constant 0 : i32
    %71 = vector.broadcast %c0_i32 : i32 to vector<8x32xi32>
    %72 = arith.cmpi eq, %18, %71 : vector<8x32xi32>
    %73 = vector.shape_cast %70 : vector<1x32xf32> to vector<1x32xf32>
    %74 = vector.broadcast %73 : vector<1x32xf32> to vector<8x32xf32>
    %75 = arith.select %72, %74, %20 : vector<8x32xi1>, vector<8x32xf32>
    %c0_i32_36 = arith.constant 0 : i32
    %76 = vector.broadcast %c0_i32_36 : i32 to vector<8x16xi32>
    %77 = arith.cmpi eq, %19, %76 : vector<8x16xi32>
    %78 = vector.shape_cast %37 : vector<1x16xf32> to vector<1x16xf32>
    %79 = vector.broadcast %78 : vector<1x16xf32> to vector<8x16xf32>
    %80 = arith.select %77, %79, %21 : vector<8x16xi1>, vector<8x16xf32>
    %c1_37 = arith.constant 1 : index
    %c0_38 = arith.constant 0 : index
    %81 = vector.load %arg8[%c1_37, %c0_38] : memref<8x128xf32, #tpu.memory_space<vmem>>, vector<1x128xf32>
    %cst_39 = arith.constant dense<0.000000e+00> : vector<1x128xf32>
    %82 = tpu.matmul %70, %11, %cst_39 {dimension_numbers = #tpu.dot_dimension_numbers<[1], [0], [0], [1], [0, 0, 1, 1], [], []>} : vector<1x32xf32>, vector<32x128xf32>, vector<1x128xf32> -> vector<1x128xf32>
    %83 = arith.addf %82, %13 : vector<1x128xf32>
    %84 = vector.extract_strided_slice %81 {offsets = [0, 0], sizes = [1, 16], strides = [1, 1]} : vector<1x128xf32> to vector<1x16xf32>
    %85 = vector.extract_strided_slice %83 {offsets = [0, 0], sizes = [1, 16], strides = [1, 1]} : vector<1x128xf32> to vector<1x16xf32>
    %86 = arith.addf %84, %85 : vector<1x16xf32>
    %cst_40 = arith.constant dense<0xFF800000> : vector<1xf32>
    %87 = vector.multi_reduction <maximumf>, %86, %cst_40 [1] : vector<1x16xf32> to vector<1xf32>
    %88 = vector.shape_cast %87 : vector<1xf32> to vector<1x1xf32>
    %89 = vector.broadcast %88 : vector<1x1xf32> to vector<1x16xf32>
    %90 = arith.subf %86, %89 : vector<1x16xf32>
    %91 = math.exp %90 : vector<1x16xf32>
    %cst_41 = arith.constant dense<0.000000e+00> : vector<1xf32>
    %92 = vector.multi_reduction <add>, %91, %cst_41 [1] : vector<1x16xf32> to vector<1xf32>
    %93 = vector.shape_cast %92 : vector<1xf32> to vector<1x1xf32>
    %94 = vector.broadcast %93 : vector<1x1xf32> to vector<1x16xf32>
    %95 = arith.divf %91, %94 : vector<1x16xf32>
    %96 = vector.extract_strided_slice %81 {offsets = [0, 16], sizes = [1, 32], strides = [1, 1]} : vector<1x128xf32> to vector<1x32xf32>
    %cst_42 = arith.constant dense<0.000000e+00> : vector<1x32xf32>
    %97 = tpu.matmul %95, %9, %cst_42 {dimension_numbers = #tpu.dot_dimension_numbers<[1], [0], [0], [1], [0, 0, 1, 1], [], []>} : vector<1x16xf32>, vector<16x32xf32>, vector<1x32xf32> -> vector<1x32xf32>
    %98 = arith.addf %96, %97 : vector<1x32xf32>
    %cst_43 = arith.constant 0.000000e+00 : f32
    %99 = vector.broadcast %cst_43 : f32 to vector<1x32xf32>
    %100 = arith.maximumf %98, %99 : vector<1x32xf32>
    %cst_44 = arith.constant dense<0.000000e+00> : vector<1x128xf32>
    %101 = tpu.matmul %100, %15, %cst_44 {dimension_numbers = #tpu.dot_dimension_numbers<[1], [0], [0], [1], [0, 0, 1, 1], [], []>} : vector<1x32xf32>, vector<32x128xf32>, vector<1x128xf32> -> vector<1x128xf32>
    %102 = arith.addf %101, %17 : vector<1x128xf32>
    %103 = vector.extract_strided_slice %102 {offsets = [0, 0], sizes = [1, 32], strides = [1, 1]} : vector<1x128xf32> to vector<1x32xf32>
    %104 = vector.extract_strided_slice %83 {offsets = [0, 16], sizes = [1, 32], strides = [1, 1]} : vector<1x128xf32> to vector<1x32xf32>
    %105 = arith.addf %103, %104 : vector<1x32xf32>
    %106 = arith.negf %105 : vector<1x32xf32>
    %107 = math.exp %106 : vector<1x32xf32>
    %cst_45 = arith.constant 1.000000e+00 : f32
    %108 = vector.broadcast %cst_45 : f32 to vector<1x32xf32>
    %109 = arith.addf %108, %107 : vector<1x32xf32>
    %110 = arith.divf %108, %109 : vector<1x32xf32>
    %111 = vector.extract_strided_slice %102 {offsets = [0, 32], sizes = [1, 32], strides = [1, 1]} : vector<1x128xf32> to vector<1x32xf32>
    %112 = vector.extract_strided_slice %83 {offsets = [0, 48], sizes = [1, 32], strides = [1, 1]} : vector<1x128xf32> to vector<1x32xf32>
    %113 = arith.addf %111, %112 : vector<1x32xf32>
    %114 = arith.negf %113 : vector<1x32xf32>
    %115 = math.exp %114 : vector<1x32xf32>
    %cst_46 = arith.constant 1.000000e+00 : f32
    %116 = vector.broadcast %cst_46 : f32 to vector<1x32xf32>
    %117 = arith.addf %116, %115 : vector<1x32xf32>
    %118 = arith.divf %116, %117 : vector<1x32xf32>
    %119 = vector.extract_strided_slice %102 {offsets = [0, 64], sizes = [1, 32], strides = [1, 1]} : vector<1x128xf32> to vector<1x32xf32>
    %120 = vector.extract_strided_slice %83 {offsets = [0, 80], sizes = [1, 32], strides = [1, 1]} : vector<1x128xf32> to vector<1x32xf32>
    %121 = arith.mulf %110, %120 : vector<1x32xf32>
    %122 = arith.addf %119, %121 : vector<1x32xf32>
    %123 = math.tanh %122 : vector<1x32xf32>
    %cst_47 = arith.constant 1.000000e+00 : f32
    %124 = vector.broadcast %cst_47 : f32 to vector<1x32xf32>
    %125 = arith.subf %124, %118 : vector<1x32xf32>
    %126 = arith.mulf %125, %123 : vector<1x32xf32>
    %127 = arith.mulf %118, %70 : vector<1x32xf32>
    %128 = arith.addf %126, %127 : vector<1x32xf32>
    %c1_i32 = arith.constant 1 : i32
    %129 = vector.broadcast %c1_i32 : i32 to vector<8x32xi32>
    %130 = arith.cmpi eq, %18, %129 : vector<8x32xi32>
    %131 = vector.shape_cast %128 : vector<1x32xf32> to vector<1x32xf32>
    %132 = vector.broadcast %131 : vector<1x32xf32> to vector<8x32xf32>
    %133 = arith.select %130, %132, %75 : vector<8x32xi1>, vector<8x32xf32>
    %c1_i32_48 = arith.constant 1 : i32
    %134 = vector.broadcast %c1_i32_48 : i32 to vector<8x16xi32>
    %135 = arith.cmpi eq, %19, %134 : vector<8x16xi32>
    %136 = vector.shape_cast %95 : vector<1x16xf32> to vector<1x16xf32>
    %137 = vector.broadcast %136 : vector<1x16xf32> to vector<8x16xf32>
    %138 = arith.select %135, %137, %80 : vector<8x16xi1>, vector<8x16xf32>
    %c2_49 = arith.constant 2 : index
    %c0_50 = arith.constant 0 : index
    %139 = vector.load %arg8[%c2_49, %c0_50] : memref<8x128xf32, #tpu.memory_space<vmem>>, vector<1x128xf32>
    %cst_51 = arith.constant dense<0.000000e+00> : vector<1x128xf32>
    %140 = tpu.matmul %128, %11, %cst_51 {dimension_numbers = #tpu.dot_dimension_numbers<[1], [0], [0], [1], [0, 0, 1, 1], [], []>} : vector<1x32xf32>, vector<32x128xf32>, vector<1x128xf32> -> vector<1x128xf32>
    %141 = arith.addf %140, %13 : vector<1x128xf32>
    %142 = vector.extract_strided_slice %139 {offsets = [0, 0], sizes = [1, 16], strides = [1, 1]} : vector<1x128xf32> to vector<1x16xf32>
    %143 = vector.extract_strided_slice %141 {offsets = [0, 0], sizes = [1, 16], strides = [1, 1]} : vector<1x128xf32> to vector<1x16xf32>
    %144 = arith.addf %142, %143 : vector<1x16xf32>
    %cst_52 = arith.constant dense<0xFF800000> : vector<1xf32>
    %145 = vector.multi_reduction <maximumf>, %144, %cst_52 [1] : vector<1x16xf32> to vector<1xf32>
    %146 = vector.shape_cast %145 : vector<1xf32> to vector<1x1xf32>
    %147 = vector.broadcast %146 : vector<1x1xf32> to vector<1x16xf32>
    %148 = arith.subf %144, %147 : vector<1x16xf32>
    %149 = math.exp %148 : vector<1x16xf32>
    %cst_53 = arith.constant dense<0.000000e+00> : vector<1xf32>
    %150 = vector.multi_reduction <add>, %149, %cst_53 [1] : vector<1x16xf32> to vector<1xf32>
    %151 = vector.shape_cast %150 : vector<1xf32> to vector<1x1xf32>
    %152 = vector.broadcast %151 : vector<1x1xf32> to vector<1x16xf32>
    %153 = arith.divf %149, %152 : vector<1x16xf32>
    %154 = vector.extract_strided_slice %139 {offsets = [0, 16], sizes = [1, 32], strides = [1, 1]} : vector<1x128xf32> to vector<1x32xf32>
    %cst_54 = arith.constant dense<0.000000e+00> : vector<1x32xf32>
    %155 = tpu.matmul %153, %9, %cst_54 {dimension_numbers = #tpu.dot_dimension_numbers<[1], [0], [0], [1], [0, 0, 1, 1], [], []>} : vector<1x16xf32>, vector<16x32xf32>, vector<1x32xf32> -> vector<1x32xf32>
    %156 = arith.addf %154, %155 : vector<1x32xf32>
    %cst_55 = arith.constant 0.000000e+00 : f32
    %157 = vector.broadcast %cst_55 : f32 to vector<1x32xf32>
    %158 = arith.maximumf %156, %157 : vector<1x32xf32>
    %cst_56 = arith.constant dense<0.000000e+00> : vector<1x128xf32>
    %159 = tpu.matmul %158, %15, %cst_56 {dimension_numbers = #tpu.dot_dimension_numbers<[1], [0], [0], [1], [0, 0, 1, 1], [], []>} : vector<1x32xf32>, vector<32x128xf32>, vector<1x128xf32> -> vector<1x128xf32>
    %160 = arith.addf %159, %17 : vector<1x128xf32>
    %161 = vector.extract_strided_slice %160 {offsets = [0, 0], sizes = [1, 32], strides = [1, 1]} : vector<1x128xf32> to vector<1x32xf32>
    %162 = vector.extract_strided_slice %141 {offsets = [0, 16], sizes = [1, 32], strides = [1, 1]} : vector<1x128xf32> to vector<1x32xf32>
    %163 = arith.addf %161, %162 : vector<1x32xf32>
    %164 = arith.negf %163 : vector<1x32xf32>
    %165 = math.exp %164 : vector<1x32xf32>
    %cst_57 = arith.constant 1.000000e+00 : f32
    %166 = vector.broadcast %cst_57 : f32 to vector<1x32xf32>
    %167 = arith.addf %166, %165 : vector<1x32xf32>
    %168 = arith.divf %166, %167 : vector<1x32xf32>
    %169 = vector.extract_strided_slice %160 {offsets = [0, 32], sizes = [1, 32], strides = [1, 1]} : vector<1x128xf32> to vector<1x32xf32>
    %170 = vector.extract_strided_slice %141 {offsets = [0, 48], sizes = [1, 32], strides = [1, 1]} : vector<1x128xf32> to vector<1x32xf32>
    %171 = arith.addf %169, %170 : vector<1x32xf32>
    %172 = arith.negf %171 : vector<1x32xf32>
    %173 = math.exp %172 : vector<1x32xf32>
    %cst_58 = arith.constant 1.000000e+00 : f32
    %174 = vector.broadcast %cst_58 : f32 to vector<1x32xf32>
    %175 = arith.addf %174, %173 : vector<1x32xf32>
    %176 = arith.divf %174, %175 : vector<1x32xf32>
    %177 = vector.extract_strided_slice %160 {offsets = [0, 64], sizes = [1, 32], strides = [1, 1]} : vector<1x128xf32> to vector<1x32xf32>
    %178 = vector.extract_strided_slice %141 {offsets = [0, 80], sizes = [1, 32], strides = [1, 1]} : vector<1x128xf32> to vector<1x32xf32>
    %179 = arith.mulf %168, %178 : vector<1x32xf32>
    %180 = arith.addf %177, %179 : vector<1x32xf32>
    %181 = math.tanh %180 : vector<1x32xf32>
    %cst_59 = arith.constant 1.000000e+00 : f32
    %182 = vector.broadcast %cst_59 : f32 to vector<1x32xf32>
    %183 = arith.subf %182, %176 : vector<1x32xf32>
    %184 = arith.mulf %183, %181 : vector<1x32xf32>
    %185 = arith.mulf %176, %128 : vector<1x32xf32>
    %186 = arith.addf %184, %185 : vector<1x32xf32>
    %c2_i32 = arith.constant 2 : i32
    %187 = vector.broadcast %c2_i32 : i32 to vector<8x32xi32>
    %188 = arith.cmpi eq, %18, %187 : vector<8x32xi32>
    %189 = vector.shape_cast %186 : vector<1x32xf32> to vector<1x32xf32>
    %190 = vector.broadcast %189 : vector<1x32xf32> to vector<8x32xf32>
    %191 = arith.select %188, %190, %133 : vector<8x32xi1>, vector<8x32xf32>
    %c2_i32_60 = arith.constant 2 : i32
    %192 = vector.broadcast %c2_i32_60 : i32 to vector<8x16xi32>
    %193 = arith.cmpi eq, %19, %192 : vector<8x16xi32>
    %194 = vector.shape_cast %153 : vector<1x16xf32> to vector<1x16xf32>
    %195 = vector.broadcast %194 : vector<1x16xf32> to vector<8x16xf32>
    %196 = arith.select %193, %195, %138 : vector<8x16xi1>, vector<8x16xf32>
    %c3 = arith.constant 3 : index
    %c0_61 = arith.constant 0 : index
    %197 = vector.load %arg8[%c3, %c0_61] : memref<8x128xf32, #tpu.memory_space<vmem>>, vector<1x128xf32>
    %cst_62 = arith.constant dense<0.000000e+00> : vector<1x128xf32>
    %198 = tpu.matmul %186, %11, %cst_62 {dimension_numbers = #tpu.dot_dimension_numbers<[1], [0], [0], [1], [0, 0, 1, 1], [], []>} : vector<1x32xf32>, vector<32x128xf32>, vector<1x128xf32> -> vector<1x128xf32>
    %199 = arith.addf %198, %13 : vector<1x128xf32>
    %200 = vector.extract_strided_slice %197 {offsets = [0, 0], sizes = [1, 16], strides = [1, 1]} : vector<1x128xf32> to vector<1x16xf32>
    %201 = vector.extract_strided_slice %199 {offsets = [0, 0], sizes = [1, 16], strides = [1, 1]} : vector<1x128xf32> to vector<1x16xf32>
    %202 = arith.addf %200, %201 : vector<1x16xf32>
    %cst_63 = arith.constant dense<0xFF800000> : vector<1xf32>
    %203 = vector.multi_reduction <maximumf>, %202, %cst_63 [1] : vector<1x16xf32> to vector<1xf32>
    %204 = vector.shape_cast %203 : vector<1xf32> to vector<1x1xf32>
    %205 = vector.broadcast %204 : vector<1x1xf32> to vector<1x16xf32>
    %206 = arith.subf %202, %205 : vector<1x16xf32>
    %207 = math.exp %206 : vector<1x16xf32>
    %cst_64 = arith.constant dense<0.000000e+00> : vector<1xf32>
    %208 = vector.multi_reduction <add>, %207, %cst_64 [1] : vector<1x16xf32> to vector<1xf32>
    %209 = vector.shape_cast %208 : vector<1xf32> to vector<1x1xf32>
    %210 = vector.broadcast %209 : vector<1x1xf32> to vector<1x16xf32>
    %211 = arith.divf %207, %210 : vector<1x16xf32>
    %212 = vector.extract_strided_slice %197 {offsets = [0, 16], sizes = [1, 32], strides = [1, 1]} : vector<1x128xf32> to vector<1x32xf32>
    %cst_65 = arith.constant dense<0.000000e+00> : vector<1x32xf32>
    %213 = tpu.matmul %211, %9, %cst_65 {dimension_numbers = #tpu.dot_dimension_numbers<[1], [0], [0], [1], [0, 0, 1, 1], [], []>} : vector<1x16xf32>, vector<16x32xf32>, vector<1x32xf32> -> vector<1x32xf32>
    %214 = arith.addf %212, %213 : vector<1x32xf32>
    %cst_66 = arith.constant 0.000000e+00 : f32
    %215 = vector.broadcast %cst_66 : f32 to vector<1x32xf32>
    %216 = arith.maximumf %214, %215 : vector<1x32xf32>
    %cst_67 = arith.constant dense<0.000000e+00> : vector<1x128xf32>
    %217 = tpu.matmul %216, %15, %cst_67 {dimension_numbers = #tpu.dot_dimension_numbers<[1], [0], [0], [1], [0, 0, 1, 1], [], []>} : vector<1x32xf32>, vector<32x128xf32>, vector<1x128xf32> -> vector<1x128xf32>
    %218 = arith.addf %217, %17 : vector<1x128xf32>
    %219 = vector.extract_strided_slice %218 {offsets = [0, 0], sizes = [1, 32], strides = [1, 1]} : vector<1x128xf32> to vector<1x32xf32>
    %220 = vector.extract_strided_slice %199 {offsets = [0, 16], sizes = [1, 32], strides = [1, 1]} : vector<1x128xf32> to vector<1x32xf32>
    %221 = arith.addf %219, %220 : vector<1x32xf32>
    %222 = arith.negf %221 : vector<1x32xf32>
    %223 = math.exp %222 : vector<1x32xf32>
    %cst_68 = arith.constant 1.000000e+00 : f32
    %224 = vector.broadcast %cst_68 : f32 to vector<1x32xf32>
    %225 = arith.addf %224, %223 : vector<1x32xf32>
    %226 = arith.divf %224, %225 : vector<1x32xf32>
    %227 = vector.extract_strided_slice %218 {offsets = [0, 32], sizes = [1, 32], strides = [1, 1]} : vector<1x128xf32> to vector<1x32xf32>
    %228 = vector.extract_strided_slice %199 {offsets = [0, 48], sizes = [1, 32], strides = [1, 1]} : vector<1x128xf32> to vector<1x32xf32>
    %229 = arith.addf %227, %228 : vector<1x32xf32>
    %230 = arith.negf %229 : vector<1x32xf32>
    %231 = math.exp %230 : vector<1x32xf32>
    %cst_69 = arith.constant 1.000000e+00 : f32
    %232 = vector.broadcast %cst_69 : f32 to vector<1x32xf32>
    %233 = arith.addf %232, %231 : vector<1x32xf32>
    %234 = arith.divf %232, %233 : vector<1x32xf32>
    %235 = vector.extract_strided_slice %218 {offsets = [0, 64], sizes = [1, 32], strides = [1, 1]} : vector<1x128xf32> to vector<1x32xf32>
    %236 = vector.extract_strided_slice %199 {offsets = [0, 80], sizes = [1, 32], strides = [1, 1]} : vector<1x128xf32> to vector<1x32xf32>
    %237 = arith.mulf %226, %236 : vector<1x32xf32>
    %238 = arith.addf %235, %237 : vector<1x32xf32>
    %239 = math.tanh %238 : vector<1x32xf32>
    %cst_70 = arith.constant 1.000000e+00 : f32
    %240 = vector.broadcast %cst_70 : f32 to vector<1x32xf32>
    %241 = arith.subf %240, %234 : vector<1x32xf32>
    %242 = arith.mulf %241, %239 : vector<1x32xf32>
    %243 = arith.mulf %234, %186 : vector<1x32xf32>
    %244 = arith.addf %242, %243 : vector<1x32xf32>
    %c3_i32 = arith.constant 3 : i32
    %245 = vector.broadcast %c3_i32 : i32 to vector<8x32xi32>
    %246 = arith.cmpi eq, %18, %245 : vector<8x32xi32>
    %247 = vector.shape_cast %244 : vector<1x32xf32> to vector<1x32xf32>
    %248 = vector.broadcast %247 : vector<1x32xf32> to vector<8x32xf32>
    %249 = arith.select %246, %248, %191 : vector<8x32xi1>, vector<8x32xf32>
    %c3_i32_71 = arith.constant 3 : i32
    %250 = vector.broadcast %c3_i32_71 : i32 to vector<8x16xi32>
    %251 = arith.cmpi eq, %19, %250 : vector<8x16xi32>
    %252 = vector.shape_cast %211 : vector<1x16xf32> to vector<1x16xf32>
    %253 = vector.broadcast %252 : vector<1x16xf32> to vector<8x16xf32>
    %254 = arith.select %251, %253, %196 : vector<8x16xi1>, vector<8x16xf32>
    %c4 = arith.constant 4 : index
    %c0_72 = arith.constant 0 : index
    %255 = vector.load %arg8[%c4, %c0_72] : memref<8x128xf32, #tpu.memory_space<vmem>>, vector<1x128xf32>
    %cst_73 = arith.constant dense<0.000000e+00> : vector<1x128xf32>
    %256 = tpu.matmul %244, %11, %cst_73 {dimension_numbers = #tpu.dot_dimension_numbers<[1], [0], [0], [1], [0, 0, 1, 1], [], []>} : vector<1x32xf32>, vector<32x128xf32>, vector<1x128xf32> -> vector<1x128xf32>
    %257 = arith.addf %256, %13 : vector<1x128xf32>
    %258 = vector.extract_strided_slice %255 {offsets = [0, 0], sizes = [1, 16], strides = [1, 1]} : vector<1x128xf32> to vector<1x16xf32>
    %259 = vector.extract_strided_slice %257 {offsets = [0, 0], sizes = [1, 16], strides = [1, 1]} : vector<1x128xf32> to vector<1x16xf32>
    %260 = arith.addf %258, %259 : vector<1x16xf32>
    %cst_74 = arith.constant dense<0xFF800000> : vector<1xf32>
    %261 = vector.multi_reduction <maximumf>, %260, %cst_74 [1] : vector<1x16xf32> to vector<1xf32>
    %262 = vector.shape_cast %261 : vector<1xf32> to vector<1x1xf32>
    %263 = vector.broadcast %262 : vector<1x1xf32> to vector<1x16xf32>
    %264 = arith.subf %260, %263 : vector<1x16xf32>
    %265 = math.exp %264 : vector<1x16xf32>
    %cst_75 = arith.constant dense<0.000000e+00> : vector<1xf32>
    %266 = vector.multi_reduction <add>, %265, %cst_75 [1] : vector<1x16xf32> to vector<1xf32>
    %267 = vector.shape_cast %266 : vector<1xf32> to vector<1x1xf32>
    %268 = vector.broadcast %267 : vector<1x1xf32> to vector<1x16xf32>
    %269 = arith.divf %265, %268 : vector<1x16xf32>
    %270 = vector.extract_strided_slice %255 {offsets = [0, 16], sizes = [1, 32], strides = [1, 1]} : vector<1x128xf32> to vector<1x32xf32>
    %cst_76 = arith.constant dense<0.000000e+00> : vector<1x32xf32>
    %271 = tpu.matmul %269, %9, %cst_76 {dimension_numbers = #tpu.dot_dimension_numbers<[1], [0], [0], [1], [0, 0, 1, 1], [], []>} : vector<1x16xf32>, vector<16x32xf32>, vector<1x32xf32> -> vector<1x32xf32>
    %272 = arith.addf %270, %271 : vector<1x32xf32>
    %cst_77 = arith.constant 0.000000e+00 : f32
    %273 = vector.broadcast %cst_77 : f32 to vector<1x32xf32>
    %274 = arith.maximumf %272, %273 : vector<1x32xf32>
    %cst_78 = arith.constant dense<0.000000e+00> : vector<1x128xf32>
    %275 = tpu.matmul %274, %15, %cst_78 {dimension_numbers = #tpu.dot_dimension_numbers<[1], [0], [0], [1], [0, 0, 1, 1], [], []>} : vector<1x32xf32>, vector<32x128xf32>, vector<1x128xf32> -> vector<1x128xf32>
    %276 = arith.addf %275, %17 : vector<1x128xf32>
    %277 = vector.extract_strided_slice %276 {offsets = [0, 0], sizes = [1, 32], strides = [1, 1]} : vector<1x128xf32> to vector<1x32xf32>
    %278 = vector.extract_strided_slice %257 {offsets = [0, 16], sizes = [1, 32], strides = [1, 1]} : vector<1x128xf32> to vector<1x32xf32>
    %279 = arith.addf %277, %278 : vector<1x32xf32>
    %280 = arith.negf %279 : vector<1x32xf32>
    %281 = math.exp %280 : vector<1x32xf32>
    %cst_79 = arith.constant 1.000000e+00 : f32
    %282 = vector.broadcast %cst_79 : f32 to vector<1x32xf32>
    %283 = arith.addf %282, %281 : vector<1x32xf32>
    %284 = arith.divf %282, %283 : vector<1x32xf32>
    %285 = vector.extract_strided_slice %276 {offsets = [0, 32], sizes = [1, 32], strides = [1, 1]} : vector<1x128xf32> to vector<1x32xf32>
    %286 = vector.extract_strided_slice %257 {offsets = [0, 48], sizes = [1, 32], strides = [1, 1]} : vector<1x128xf32> to vector<1x32xf32>
    %287 = arith.addf %285, %286 : vector<1x32xf32>
    %288 = arith.negf %287 : vector<1x32xf32>
    %289 = math.exp %288 : vector<1x32xf32>
    %cst_80 = arith.constant 1.000000e+00 : f32
    %290 = vector.broadcast %cst_80 : f32 to vector<1x32xf32>
    %291 = arith.addf %290, %289 : vector<1x32xf32>
    %292 = arith.divf %290, %291 : vector<1x32xf32>
    %293 = vector.extract_strided_slice %276 {offsets = [0, 64], sizes = [1, 32], strides = [1, 1]} : vector<1x128xf32> to vector<1x32xf32>
    %294 = vector.extract_strided_slice %257 {offsets = [0, 80], sizes = [1, 32], strides = [1, 1]} : vector<1x128xf32> to vector<1x32xf32>
    %295 = arith.mulf %284, %294 : vector<1x32xf32>
    %296 = arith.addf %293, %295 : vector<1x32xf32>
    %297 = math.tanh %296 : vector<1x32xf32>
    %cst_81 = arith.constant 1.000000e+00 : f32
    %298 = vector.broadcast %cst_81 : f32 to vector<1x32xf32>
    %299 = arith.subf %298, %292 : vector<1x32xf32>
    %300 = arith.mulf %299, %297 : vector<1x32xf32>
    %301 = arith.mulf %292, %244 : vector<1x32xf32>
    %302 = arith.addf %300, %301 : vector<1x32xf32>
    %c4_i32 = arith.constant 4 : i32
    %303 = vector.broadcast %c4_i32 : i32 to vector<8x32xi32>
    %304 = arith.cmpi eq, %18, %303 : vector<8x32xi32>
    %305 = vector.shape_cast %302 : vector<1x32xf32> to vector<1x32xf32>
    %306 = vector.broadcast %305 : vector<1x32xf32> to vector<8x32xf32>
    %307 = arith.select %304, %306, %249 : vector<8x32xi1>, vector<8x32xf32>
    %c4_i32_82 = arith.constant 4 : i32
    %308 = vector.broadcast %c4_i32_82 : i32 to vector<8x16xi32>
    %309 = arith.cmpi eq, %19, %308 : vector<8x16xi32>
    %310 = vector.shape_cast %269 : vector<1x16xf32> to vector<1x16xf32>
    %311 = vector.broadcast %310 : vector<1x16xf32> to vector<8x16xf32>
    %312 = arith.select %309, %311, %254 : vector<8x16xi1>, vector<8x16xf32>
    %c5 = arith.constant 5 : index
    %c0_83 = arith.constant 0 : index
    %313 = vector.load %arg8[%c5, %c0_83] : memref<8x128xf32, #tpu.memory_space<vmem>>, vector<1x128xf32>
    %cst_84 = arith.constant dense<0.000000e+00> : vector<1x128xf32>
    %314 = tpu.matmul %302, %11, %cst_84 {dimension_numbers = #tpu.dot_dimension_numbers<[1], [0], [0], [1], [0, 0, 1, 1], [], []>} : vector<1x32xf32>, vector<32x128xf32>, vector<1x128xf32> -> vector<1x128xf32>
    %315 = arith.addf %314, %13 : vector<1x128xf32>
    %316 = vector.extract_strided_slice %313 {offsets = [0, 0], sizes = [1, 16], strides = [1, 1]} : vector<1x128xf32> to vector<1x16xf32>
    %317 = vector.extract_strided_slice %315 {offsets = [0, 0], sizes = [1, 16], strides = [1, 1]} : vector<1x128xf32> to vector<1x16xf32>
    %318 = arith.addf %316, %317 : vector<1x16xf32>
    %cst_85 = arith.constant dense<0xFF800000> : vector<1xf32>
    %319 = vector.multi_reduction <maximumf>, %318, %cst_85 [1] : vector<1x16xf32> to vector<1xf32>
    %320 = vector.shape_cast %319 : vector<1xf32> to vector<1x1xf32>
    %321 = vector.broadcast %320 : vector<1x1xf32> to vector<1x16xf32>
    %322 = arith.subf %318, %321 : vector<1x16xf32>
    %323 = math.exp %322 : vector<1x16xf32>
    %cst_86 = arith.constant dense<0.000000e+00> : vector<1xf32>
    %324 = vector.multi_reduction <add>, %323, %cst_86 [1] : vector<1x16xf32> to vector<1xf32>
    %325 = vector.shape_cast %324 : vector<1xf32> to vector<1x1xf32>
    %326 = vector.broadcast %325 : vector<1x1xf32> to vector<1x16xf32>
    %327 = arith.divf %323, %326 : vector<1x16xf32>
    %328 = vector.extract_strided_slice %313 {offsets = [0, 16], sizes = [1, 32], strides = [1, 1]} : vector<1x128xf32> to vector<1x32xf32>
    %cst_87 = arith.constant dense<0.000000e+00> : vector<1x32xf32>
    %329 = tpu.matmul %327, %9, %cst_87 {dimension_numbers = #tpu.dot_dimension_numbers<[1], [0], [0], [1], [0, 0, 1, 1], [], []>} : vector<1x16xf32>, vector<16x32xf32>, vector<1x32xf32> -> vector<1x32xf32>
    %330 = arith.addf %328, %329 : vector<1x32xf32>
    %cst_88 = arith.constant 0.000000e+00 : f32
    %331 = vector.broadcast %cst_88 : f32 to vector<1x32xf32>
    %332 = arith.maximumf %330, %331 : vector<1x32xf32>
    %cst_89 = arith.constant dense<0.000000e+00> : vector<1x128xf32>
    %333 = tpu.matmul %332, %15, %cst_89 {dimension_numbers = #tpu.dot_dimension_numbers<[1], [0], [0], [1], [0, 0, 1, 1], [], []>} : vector<1x32xf32>, vector<32x128xf32>, vector<1x128xf32> -> vector<1x128xf32>
    %334 = arith.addf %333, %17 : vector<1x128xf32>
    %335 = vector.extract_strided_slice %334 {offsets = [0, 0], sizes = [1, 32], strides = [1, 1]} : vector<1x128xf32> to vector<1x32xf32>
    %336 = vector.extract_strided_slice %315 {offsets = [0, 16], sizes = [1, 32], strides = [1, 1]} : vector<1x128xf32> to vector<1x32xf32>
    %337 = arith.addf %335, %336 : vector<1x32xf32>
    %338 = arith.negf %337 : vector<1x32xf32>
    %339 = math.exp %338 : vector<1x32xf32>
    %cst_90 = arith.constant 1.000000e+00 : f32
    %340 = vector.broadcast %cst_90 : f32 to vector<1x32xf32>
    %341 = arith.addf %340, %339 : vector<1x32xf32>
    %342 = arith.divf %340, %341 : vector<1x32xf32>
    %343 = vector.extract_strided_slice %334 {offsets = [0, 32], sizes = [1, 32], strides = [1, 1]} : vector<1x128xf32> to vector<1x32xf32>
    %344 = vector.extract_strided_slice %315 {offsets = [0, 48], sizes = [1, 32], strides = [1, 1]} : vector<1x128xf32> to vector<1x32xf32>
    %345 = arith.addf %343, %344 : vector<1x32xf32>
    %346 = arith.negf %345 : vector<1x32xf32>
    %347 = math.exp %346 : vector<1x32xf32>
    %cst_91 = arith.constant 1.000000e+00 : f32
    %348 = vector.broadcast %cst_91 : f32 to vector<1x32xf32>
    %349 = arith.addf %348, %347 : vector<1x32xf32>
    %350 = arith.divf %348, %349 : vector<1x32xf32>
    %351 = vector.extract_strided_slice %334 {offsets = [0, 64], sizes = [1, 32], strides = [1, 1]} : vector<1x128xf32> to vector<1x32xf32>
    %352 = vector.extract_strided_slice %315 {offsets = [0, 80], sizes = [1, 32], strides = [1, 1]} : vector<1x128xf32> to vector<1x32xf32>
    %353 = arith.mulf %342, %352 : vector<1x32xf32>
    %354 = arith.addf %351, %353 : vector<1x32xf32>
    %355 = math.tanh %354 : vector<1x32xf32>
    %cst_92 = arith.constant 1.000000e+00 : f32
    %356 = vector.broadcast %cst_92 : f32 to vector<1x32xf32>
    %357 = arith.subf %356, %350 : vector<1x32xf32>
    %358 = arith.mulf %357, %355 : vector<1x32xf32>
    %359 = arith.mulf %350, %302 : vector<1x32xf32>
    %360 = arith.addf %358, %359 : vector<1x32xf32>
    %c5_i32 = arith.constant 5 : i32
    %361 = vector.broadcast %c5_i32 : i32 to vector<8x32xi32>
    %362 = arith.cmpi eq, %18, %361 : vector<8x32xi32>
    %363 = vector.shape_cast %360 : vector<1x32xf32> to vector<1x32xf32>
    %364 = vector.broadcast %363 : vector<1x32xf32> to vector<8x32xf32>
    %365 = arith.select %362, %364, %307 : vector<8x32xi1>, vector<8x32xf32>
    %c5_i32_93 = arith.constant 5 : i32
    %366 = vector.broadcast %c5_i32_93 : i32 to vector<8x16xi32>
    %367 = arith.cmpi eq, %19, %366 : vector<8x16xi32>
    %368 = vector.shape_cast %327 : vector<1x16xf32> to vector<1x16xf32>
    %369 = vector.broadcast %368 : vector<1x16xf32> to vector<8x16xf32>
    %370 = arith.select %367, %369, %312 : vector<8x16xi1>, vector<8x16xf32>
    %c6 = arith.constant 6 : index
    %c0_94 = arith.constant 0 : index
    %371 = vector.load %arg8[%c6, %c0_94] : memref<8x128xf32, #tpu.memory_space<vmem>>, vector<1x128xf32>
    %cst_95 = arith.constant dense<0.000000e+00> : vector<1x128xf32>
    %372 = tpu.matmul %360, %11, %cst_95 {dimension_numbers = #tpu.dot_dimension_numbers<[1], [0], [0], [1], [0, 0, 1, 1], [], []>} : vector<1x32xf32>, vector<32x128xf32>, vector<1x128xf32> -> vector<1x128xf32>
    %373 = arith.addf %372, %13 : vector<1x128xf32>
    %374 = vector.extract_strided_slice %371 {offsets = [0, 0], sizes = [1, 16], strides = [1, 1]} : vector<1x128xf32> to vector<1x16xf32>
    %375 = vector.extract_strided_slice %373 {offsets = [0, 0], sizes = [1, 16], strides = [1, 1]} : vector<1x128xf32> to vector<1x16xf32>
    %376 = arith.addf %374, %375 : vector<1x16xf32>
    %cst_96 = arith.constant dense<0xFF800000> : vector<1xf32>
    %377 = vector.multi_reduction <maximumf>, %376, %cst_96 [1] : vector<1x16xf32> to vector<1xf32>
    %378 = vector.shape_cast %377 : vector<1xf32> to vector<1x1xf32>
    %379 = vector.broadcast %378 : vector<1x1xf32> to vector<1x16xf32>
    %380 = arith.subf %376, %379 : vector<1x16xf32>
    %381 = math.exp %380 : vector<1x16xf32>
    %cst_97 = arith.constant dense<0.000000e+00> : vector<1xf32>
    %382 = vector.multi_reduction <add>, %381, %cst_97 [1] : vector<1x16xf32> to vector<1xf32>
    %383 = vector.shape_cast %382 : vector<1xf32> to vector<1x1xf32>
    %384 = vector.broadcast %383 : vector<1x1xf32> to vector<1x16xf32>
    %385 = arith.divf %381, %384 : vector<1x16xf32>
    %386 = vector.extract_strided_slice %371 {offsets = [0, 16], sizes = [1, 32], strides = [1, 1]} : vector<1x128xf32> to vector<1x32xf32>
    %cst_98 = arith.constant dense<0.000000e+00> : vector<1x32xf32>
    %387 = tpu.matmul %385, %9, %cst_98 {dimension_numbers = #tpu.dot_dimension_numbers<[1], [0], [0], [1], [0, 0, 1, 1], [], []>} : vector<1x16xf32>, vector<16x32xf32>, vector<1x32xf32> -> vector<1x32xf32>
    %388 = arith.addf %386, %387 : vector<1x32xf32>
    %cst_99 = arith.constant 0.000000e+00 : f32
    %389 = vector.broadcast %cst_99 : f32 to vector<1x32xf32>
    %390 = arith.maximumf %388, %389 : vector<1x32xf32>
    %cst_100 = arith.constant dense<0.000000e+00> : vector<1x128xf32>
    %391 = tpu.matmul %390, %15, %cst_100 {dimension_numbers = #tpu.dot_dimension_numbers<[1], [0], [0], [1], [0, 0, 1, 1], [], []>} : vector<1x32xf32>, vector<32x128xf32>, vector<1x128xf32> -> vector<1x128xf32>
    %392 = arith.addf %391, %17 : vector<1x128xf32>
    %393 = vector.extract_strided_slice %392 {offsets = [0, 0], sizes = [1, 32], strides = [1, 1]} : vector<1x128xf32> to vector<1x32xf32>
    %394 = vector.extract_strided_slice %373 {offsets = [0, 16], sizes = [1, 32], strides = [1, 1]} : vector<1x128xf32> to vector<1x32xf32>
    %395 = arith.addf %393, %394 : vector<1x32xf32>
    %396 = arith.negf %395 : vector<1x32xf32>
    %397 = math.exp %396 : vector<1x32xf32>
    %cst_101 = arith.constant 1.000000e+00 : f32
    %398 = vector.broadcast %cst_101 : f32 to vector<1x32xf32>
    %399 = arith.addf %398, %397 : vector<1x32xf32>
    %400 = arith.divf %398, %399 : vector<1x32xf32>
    %401 = vector.extract_strided_slice %392 {offsets = [0, 32], sizes = [1, 32], strides = [1, 1]} : vector<1x128xf32> to vector<1x32xf32>
    %402 = vector.extract_strided_slice %373 {offsets = [0, 48], sizes = [1, 32], strides = [1, 1]} : vector<1x128xf32> to vector<1x32xf32>
    %403 = arith.addf %401, %402 : vector<1x32xf32>
    %404 = arith.negf %403 : vector<1x32xf32>
    %405 = math.exp %404 : vector<1x32xf32>
    %cst_102 = arith.constant 1.000000e+00 : f32
    %406 = vector.broadcast %cst_102 : f32 to vector<1x32xf32>
    %407 = arith.addf %406, %405 : vector<1x32xf32>
    %408 = arith.divf %406, %407 : vector<1x32xf32>
    %409 = vector.extract_strided_slice %392 {offsets = [0, 64], sizes = [1, 32], strides = [1, 1]} : vector<1x128xf32> to vector<1x32xf32>
    %410 = vector.extract_strided_slice %373 {offsets = [0, 80], sizes = [1, 32], strides = [1, 1]} : vector<1x128xf32> to vector<1x32xf32>
    %411 = arith.mulf %400, %410 : vector<1x32xf32>
    %412 = arith.addf %409, %411 : vector<1x32xf32>
    %413 = math.tanh %412 : vector<1x32xf32>
    %cst_103 = arith.constant 1.000000e+00 : f32
    %414 = vector.broadcast %cst_103 : f32 to vector<1x32xf32>
    %415 = arith.subf %414, %408 : vector<1x32xf32>
    %416 = arith.mulf %415, %413 : vector<1x32xf32>
    %417 = arith.mulf %408, %360 : vector<1x32xf32>
    %418 = arith.addf %416, %417 : vector<1x32xf32>
    %c6_i32 = arith.constant 6 : i32
    %419 = vector.broadcast %c6_i32 : i32 to vector<8x32xi32>
    %420 = arith.cmpi eq, %18, %419 : vector<8x32xi32>
    %421 = vector.shape_cast %418 : vector<1x32xf32> to vector<1x32xf32>
    %422 = vector.broadcast %421 : vector<1x32xf32> to vector<8x32xf32>
    %423 = arith.select %420, %422, %365 : vector<8x32xi1>, vector<8x32xf32>
    %c6_i32_104 = arith.constant 6 : i32
    %424 = vector.broadcast %c6_i32_104 : i32 to vector<8x16xi32>
    %425 = arith.cmpi eq, %19, %424 : vector<8x16xi32>
    %426 = vector.shape_cast %385 : vector<1x16xf32> to vector<1x16xf32>
    %427 = vector.broadcast %426 : vector<1x16xf32> to vector<8x16xf32>
    %428 = arith.select %425, %427, %370 : vector<8x16xi1>, vector<8x16xf32>
    %c7 = arith.constant 7 : index
    %c0_105 = arith.constant 0 : index
    %429 = vector.load %arg8[%c7, %c0_105] : memref<8x128xf32, #tpu.memory_space<vmem>>, vector<1x128xf32>
    %cst_106 = arith.constant dense<0.000000e+00> : vector<1x128xf32>
    %430 = tpu.matmul %418, %11, %cst_106 {dimension_numbers = #tpu.dot_dimension_numbers<[1], [0], [0], [1], [0, 0, 1, 1], [], []>} : vector<1x32xf32>, vector<32x128xf32>, vector<1x128xf32> -> vector<1x128xf32>
    %431 = arith.addf %430, %13 : vector<1x128xf32>
    %432 = vector.extract_strided_slice %429 {offsets = [0, 0], sizes = [1, 16], strides = [1, 1]} : vector<1x128xf32> to vector<1x16xf32>
    %433 = vector.extract_strided_slice %431 {offsets = [0, 0], sizes = [1, 16], strides = [1, 1]} : vector<1x128xf32> to vector<1x16xf32>
    %434 = arith.addf %432, %433 : vector<1x16xf32>
    %cst_107 = arith.constant dense<0xFF800000> : vector<1xf32>
    %435 = vector.multi_reduction <maximumf>, %434, %cst_107 [1] : vector<1x16xf32> to vector<1xf32>
    %436 = vector.shape_cast %435 : vector<1xf32> to vector<1x1xf32>
    %437 = vector.broadcast %436 : vector<1x1xf32> to vector<1x16xf32>
    %438 = arith.subf %434, %437 : vector<1x16xf32>
    %439 = math.exp %438 : vector<1x16xf32>
    %cst_108 = arith.constant dense<0.000000e+00> : vector<1xf32>
    %440 = vector.multi_reduction <add>, %439, %cst_108 [1] : vector<1x16xf32> to vector<1xf32>
    %441 = vector.shape_cast %440 : vector<1xf32> to vector<1x1xf32>
    %442 = vector.broadcast %441 : vector<1x1xf32> to vector<1x16xf32>
    %443 = arith.divf %439, %442 : vector<1x16xf32>
    %444 = vector.extract_strided_slice %429 {offsets = [0, 16], sizes = [1, 32], strides = [1, 1]} : vector<1x128xf32> to vector<1x32xf32>
    %cst_109 = arith.constant dense<0.000000e+00> : vector<1x32xf32>
    %445 = tpu.matmul %443, %9, %cst_109 {dimension_numbers = #tpu.dot_dimension_numbers<[1], [0], [0], [1], [0, 0, 1, 1], [], []>} : vector<1x16xf32>, vector<16x32xf32>, vector<1x32xf32> -> vector<1x32xf32>
    %446 = arith.addf %444, %445 : vector<1x32xf32>
    %cst_110 = arith.constant 0.000000e+00 : f32
    %447 = vector.broadcast %cst_110 : f32 to vector<1x32xf32>
    %448 = arith.maximumf %446, %447 : vector<1x32xf32>
    %cst_111 = arith.constant dense<0.000000e+00> : vector<1x128xf32>
    %449 = tpu.matmul %448, %15, %cst_111 {dimension_numbers = #tpu.dot_dimension_numbers<[1], [0], [0], [1], [0, 0, 1, 1], [], []>} : vector<1x32xf32>, vector<32x128xf32>, vector<1x128xf32> -> vector<1x128xf32>
    %450 = arith.addf %449, %17 : vector<1x128xf32>
    %451 = vector.extract_strided_slice %450 {offsets = [0, 0], sizes = [1, 32], strides = [1, 1]} : vector<1x128xf32> to vector<1x32xf32>
    %452 = vector.extract_strided_slice %431 {offsets = [0, 16], sizes = [1, 32], strides = [1, 1]} : vector<1x128xf32> to vector<1x32xf32>
    %453 = arith.addf %451, %452 : vector<1x32xf32>
    %454 = arith.negf %453 : vector<1x32xf32>
    %455 = math.exp %454 : vector<1x32xf32>
    %cst_112 = arith.constant 1.000000e+00 : f32
    %456 = vector.broadcast %cst_112 : f32 to vector<1x32xf32>
    %457 = arith.addf %456, %455 : vector<1x32xf32>
    %458 = arith.divf %456, %457 : vector<1x32xf32>
    %459 = vector.extract_strided_slice %450 {offsets = [0, 32], sizes = [1, 32], strides = [1, 1]} : vector<1x128xf32> to vector<1x32xf32>
    %460 = vector.extract_strided_slice %431 {offsets = [0, 48], sizes = [1, 32], strides = [1, 1]} : vector<1x128xf32> to vector<1x32xf32>
    %461 = arith.addf %459, %460 : vector<1x32xf32>
    %462 = arith.negf %461 : vector<1x32xf32>
    %463 = math.exp %462 : vector<1x32xf32>
    %cst_113 = arith.constant 1.000000e+00 : f32
    %464 = vector.broadcast %cst_113 : f32 to vector<1x32xf32>
    %465 = arith.addf %464, %463 : vector<1x32xf32>
    %466 = arith.divf %464, %465 : vector<1x32xf32>
    %467 = vector.extract_strided_slice %450 {offsets = [0, 64], sizes = [1, 32], strides = [1, 1]} : vector<1x128xf32> to vector<1x32xf32>
    %468 = vector.extract_strided_slice %431 {offsets = [0, 80], sizes = [1, 32], strides = [1, 1]} : vector<1x128xf32> to vector<1x32xf32>
    %469 = arith.mulf %458, %468 : vector<1x32xf32>
    %470 = arith.addf %467, %469 : vector<1x32xf32>
    %471 = math.tanh %470 : vector<1x32xf32>
    %cst_114 = arith.constant 1.000000e+00 : f32
    %472 = vector.broadcast %cst_114 : f32 to vector<1x32xf32>
    %473 = arith.subf %472, %466 : vector<1x32xf32>
    %474 = arith.mulf %473, %471 : vector<1x32xf32>
    %475 = arith.mulf %466, %418 : vector<1x32xf32>
    %476 = arith.addf %474, %475 : vector<1x32xf32>
    %c7_i32 = arith.constant 7 : i32
    %477 = vector.broadcast %c7_i32 : i32 to vector<8x32xi32>
    %478 = arith.cmpi eq, %18, %477 : vector<8x32xi32>
    %479 = vector.shape_cast %476 : vector<1x32xf32> to vector<1x32xf32>
    %480 = vector.broadcast %479 : vector<1x32xf32> to vector<8x32xf32>
    %481 = arith.select %478, %480, %423 : vector<8x32xi1>, vector<8x32xf32>
    %c7_i32_115 = arith.constant 7 : i32
    %482 = vector.broadcast %c7_i32_115 : i32 to vector<8x16xi32>
    %483 = arith.cmpi eq, %19, %482 : vector<8x16xi32>
    %484 = vector.shape_cast %443 : vector<1x16xf32> to vector<1x16xf32>
    %485 = vector.broadcast %484 : vector<1x16xf32> to vector<8x16xf32>
    %486 = arith.select %483, %485, %428 : vector<8x16xi1>, vector<8x16xf32>
    %c0_116 = arith.constant 0 : index
    %c0_117 = arith.constant 0 : index
    %487 = vector.load %arg5[%c0_116, %c0_117] : memref<32x128xf32, #tpu.memory_space<vmem>>, vector<32x128xf32>
    %cst_118 = arith.constant dense<0.000000e+00> : vector<8x128xf32>
    %488 = tpu.matmul %481, %487, %cst_118 {dimension_numbers = #tpu.dot_dimension_numbers<[1], [0], [0], [1], [0, 0, 1, 1], [], []>} : vector<8x32xf32>, vector<32x128xf32>, vector<8x128xf32> -> vector<8x128xf32>
    %c0_119 = arith.constant 0 : index
    %c0_120 = arith.constant 0 : index
    %489 = vector.load %arg6[%c0_119, %c0_120] : memref<1x128xf32, #tpu.memory_space<vmem>>, vector<1x128xf32>
    %490 = vector.broadcast %489 : vector<1x128xf32> to vector<8x128xf32>
    %491 = arith.addf %488, %490 : vector<8x128xf32>
    %cst_121 = arith.constant dense<0xFF800000> : vector<8xf32>
    %492 = vector.multi_reduction <maximumf>, %491, %cst_121 [1] : vector<8x128xf32> to vector<8xf32>
    %493 = vector.shape_cast %492 : vector<8xf32> to vector<8x1xf32>
    %494 = vector.broadcast %493 : vector<8x1xf32> to vector<8x128xf32>
    %495 = arith.subf %491, %494 : vector<8x128xf32>
    %496 = math.exp %495 : vector<8x128xf32>
    %cst_122 = arith.constant dense<0.000000e+00> : vector<8xf32>
    %497 = vector.multi_reduction <add>, %496, %cst_122 [1] : vector<8x128xf32> to vector<8xf32>
    %498 = vector.shape_cast %497 : vector<8xf32> to vector<8x1xf32>
    %499 = math.log %498 : vector<8x1xf32>
    %500 = vector.broadcast %499 : vector<8x1xf32> to vector<8x128xf32>
    %501 = arith.subf %495, %500 : vector<8x128xf32>
    %502 = tpu.iota {dimensions = array<i32: 1>} : vector<8x128xi32>
    %c40_i32 = arith.constant 40 : i32
    %503 = vector.broadcast %c40_i32 : i32 to vector<8x128xi32>
    %504 = arith.cmpi slt, %502, %503 : vector<8x128xi32>
    %cst_123 = arith.constant 0.000000e+00 : f32
    %505 = vector.broadcast %cst_123 : f32 to vector<8x128xf32>
    %506 = arith.select %504, %501, %505 : vector<8x128xi1>, vector<8x128xf32>
    %507 = tpu.iota {dimensions = array<i32: 1>} : vector<32x128xi32>
    %508 = tpu.iota {dimensions = array<i32: 0>} : vector<32x128xi32>
    %c40_i32_124 = arith.constant 40 : i32
    %509 = vector.broadcast %c40_i32_124 : i32 to vector<32x128xi32>
    %510 = arith.addi %508, %509 : vector<32x128xi32>
    %511 = arith.cmpi eq, %507, %510 : vector<32x128xi32>
    %512 = arith.extui %511 : vector<32x128xi1> to vector<32x128xi32>
    %513 = arith.sitofp %512 : vector<32x128xi32> to vector<32x128xf32>
    %514 = tpu.iota {dimensions = array<i32: 1>} : vector<16x128xi32>
    %515 = tpu.iota {dimensions = array<i32: 0>} : vector<16x128xi32>
    %c72_i32 = arith.constant 72 : i32
    %516 = vector.broadcast %c72_i32 : i32 to vector<16x128xi32>
    %517 = arith.addi %515, %516 : vector<16x128xi32>
    %518 = arith.cmpi eq, %514, %517 : vector<16x128xi32>
    %519 = arith.extui %518 : vector<16x128xi1> to vector<16x128xi32>
    %520 = arith.sitofp %519 : vector<16x128xi32> to vector<16x128xf32>
    %cst_125 = arith.constant dense<0.000000e+00> : vector<8x128xf32>
    %521 = tpu.matmul %481, %513, %cst_125 {dimension_numbers = #tpu.dot_dimension_numbers<[1], [0], [0], [1], [0, 0, 1, 1], [], []>} : vector<8x32xf32>, vector<32x128xf32>, vector<8x128xf32> -> vector<8x128xf32>
    %522 = arith.addf %506, %521 : vector<8x128xf32>
    %cst_126 = arith.constant dense<0.000000e+00> : vector<8x128xf32>
    %523 = tpu.matmul %486, %520, %cst_126 {dimension_numbers = #tpu.dot_dimension_numbers<[1], [0], [0], [1], [0, 0, 1, 1], [], []>} : vector<8x16xf32>, vector<16x128xf32>, vector<8x128xf32> -> vector<8x128xf32>
    %524 = arith.addf %522, %523 : vector<8x128xf32>
    %c0_127 = arith.constant 0 : index
    %c0_128 = arith.constant 0 : index
    %525 = vector.load %arg7[%c0_127, %c0_128] : memref<8x128xf32, #tpu.memory_space<vmem>>, vector<8x128xf32>
    tpu.vector_store %arg7[%c0_127, %c0_128], %524 {strides = array<i32>} : memref<8x128xf32, #tpu.memory_space<vmem>>, vector<8x128xf32>,
    return
  }
}

</mosaic_0001>

<bundles_post_ra>
// kernel: tpu_custom_call.1
= control target key start
LH: loop header
LB: loop body
LE: loop exit
PB: predicated region body
PF: predicated region fallthrough
CT: control target
= control target key end

     0   :  { %12 = vsyncpa [#allocation4], 0  ;;  %s4110_s0 = inlined_call_operand.hbm [shape: f32[8,32], index: 0, kind: input, shape index: {}]   ;;  %s4111_s1 = inlined_call_operand.vmem [shape: f32[1,32], index: 1, kind: input, shape index: {}]   ;;  %s4112_s2 = inlined_call_operand.hbm [shape: f32[16,32], index: 2, kind: input, shape index: {}]   ;;  %s4113_s3 = inlined_call_operand.hbm [shape: f32[3,32,128], index: 3, kind: input, shape index: {}]   ;;  %s4114_s4 = inlined_call_operand.vmem [shape: f32[3,1,128], index: 4, kind: input, shape index: {}]   ;;  %s4115_s5 = inlined_call_operand.hbm [shape: f32[32,128], index: 5, kind: input, shape index: {}]   ;;  %s4116_s6 = inlined_call_operand.vmem [shape: f32[1,128], index: 6, kind: input, shape index: {}]   ;;  %s4117_s7 = inlined_call_operand.hbm [shape: f32[8,128], index: 7, kind: output, shape index: {}]  }
   0x1   :  { %13 = vsyncpa [#allocation7], 0 }
   0x2   :  { %14 = vsyncpa [#allocation10], 0 }
   0x3   :  { %15 = vsyncpa [#allocation5], 0  ;;  %s3550_s24 = smov [#allocation6]   ;;  %s3432_s28 = scalar_lea.hbm %s4112_s2, 256 }
   0x4   :  { %s33_s25 = sshll.u32 %s3550_s24, 4  ;;  %p3433_p0 = scmp.ne.s32.totalorder %s4112_s2, %s3432_s28  ;;  %s34_s25 = int_to_ptr.vmem [resolvable:$true] %s33_s25 }
   0x5   :  { %p3436_p1 = scmp.lt.u32.totalorder %s3432_s28, %s4112_s2 }
   0x7   :  { %p3438_p2 = pnand %p3436_p1, %p3433_p0 }
   0x9   :  { %3441 = shalt.err (!%p3438_p2)
}
   0xa   :  { %s3442_s10 = scalar_lea.vmem %s34_s25, 256  ;;  %p3447_p4 = scmp.lt.s32.totalorder %s34_s25, %s34_s25 }
   0xb   :  { %p3443_p3 = scmp.ne.s32.totalorder %s34_s25, %s3442_s10  ;;  %p3448_p5 = scmp.lt.s32.totalorder %s3442_s10, %s3442_s10 }
   0xd   :  { %p3449_p6 = por %p3448_p5, %p3447_p4 }
   0xf   :  { %p3450_p7 = pnand %p3449_p6, %p3443_p3 }
  0x11   :  { %3453 = shalt.err (!%p3450_p7)
}
  0x12   :  { %s3551_s11 = smov 128   ;;  %s3552_s12 = smov 8  }
  0x13   :  { %39 = dma.hbm_to_vmem [thread:$0]  %s4112_s2, 256, %s34_s25, [#allocation7], %s3551_s11, %s3551_s11, %s3552_s12  }
  0x14   :  { %s3553_s15 = smov [#allocation3]   ;;  %s3554_s17 = smov [#allocation8]  }
  0x15   :  { %s22_s16 = sshll.u32 %s3553_s15, 4  ;;  %s45_s18 = sshll.u32 %s3554_s17, 4  ;;  %s23_s16 = int_to_ptr.vmem [resolvable:$true] %s22_s16  ;;  %s46_s18 = int_to_ptr.vmem [resolvable:$true] %s45_s18 }
  0x16   :  { %s3454_s21 = scalar_lea.hbm %s4110_s0, 128 }
  0x17   :  { %p3455_p8 = scmp.ne.s32.totalorder %s4110_s0, %s3454_s21  ;;  %p3458_p9 = scmp.lt.u32.totalorder %s3454_s21, %s4110_s0 }
  0x19   :  { %p3460_p10 = pnand %p3458_p9, %p3455_p8 }
  0x1b   :  { %3463 = shalt.err (!%p3460_p10)
}
  0x1c   :  { %s3464_s2 = scalar_lea.vmem %s23_s16, 128  ;;  %p3469_p12 = scmp.lt.s32.totalorder %s23_s16, %s23_s16 }
  0x1d   :  { %p3465_p11 = scmp.ne.s32.totalorder %s23_s16, %s3464_s2  ;;  %p3470_p13 = scmp.lt.s32.totalorder %s3464_s2, %s3464_s2 }
  0x1f   :  { %p3471_p0 = por %p3470_p13, %p3469_p12 }
  0x21   :  { %p3472_p1 = pnand %p3471_p0, %p3465_p11 }
  0x23   :  { %3475 = shalt.err (!%p3472_p1)
}
  0x24   :  { %25 = dma.hbm_to_vmem [thread:$0]  %s4110_s0, 128, %s23_s16, [#allocation4]  }
  0x25   :  { %s3476_s30 = scalar_lea.hbm %s4113_s3, 1536 }
  0x26   :  { %p3477_p2 = scmp.ne.s32.totalorder %s4113_s3, %s3476_s30  ;;  %p3480_p3 = scmp.lt.u32.totalorder %s3476_s30, %s4113_s3 }
  0x28   :  { %p3482_p4 = pnand %p3480_p3, %p3477_p2 }
  0x2a   :  { %3485 = shalt.err (!%p3482_p4)
}
  0x2b   :  { %s3486_s14 = scalar_lea.vmem %s46_s18, 1536  ;;  %p3491_p6 = scmp.lt.s32.totalorder %s46_s18, %s46_s18 }
  0x2c   :  { %p3487_p5 = scmp.ne.s32.totalorder %s46_s18, %s3486_s14  ;;  %p3492_p7 = scmp.lt.s32.totalorder %s3486_s14, %s3486_s14 }
  0x2e   :  { %p3493_p8 = por %p3492_p7, %p3491_p6 }
  0x30   :  { %p3494_p9 = pnand %p3493_p8, %p3487_p5 }
  0x32   :  { %3497 = shalt.err (!%p3494_p9)
}
  0x33   :  { %51 = dma.hbm_to_vmem [thread:$0]  %s4113_s3, 1536, %s46_s18, [#allocation7], %s3551_s11, %s3551_s11, %s3552_s12  }
  0x34   :  { %s3555_s16 = smov [#allocation9]   ;;  %s3498_s21 = scalar_lea.hbm %s4115_s5, 512 }
  0x35   :  { %s59_s17 = sshll.u32 %s3555_s16, 4  ;;  %p3499_p10 = scmp.ne.s32.totalorder %s4115_s5, %s3498_s21  ;;  %s60_s17 = int_to_ptr.vmem [resolvable:$true] %s59_s17 }
  0x36   :  { %p3502_p11 = scmp.lt.u32.totalorder %s3498_s21, %s4115_s5 }
  0x38   :  { %p3504_p12 = pnand %p3502_p11, %p3499_p10 }
  0x3a   :  { %3507 = shalt.err (!%p3504_p12)
}
  0x3b   :  { %s3508_s2 = scalar_lea.vmem %s60_s17, 512  ;;  %p3513_p0 = scmp.lt.s32.totalorder %s60_s17, %s60_s17 }
  0x3c   :  { %p3509_p13 = scmp.ne.s32.totalorder %s60_s17, %s3508_s2  ;;  %p3514_p1 = scmp.lt.s32.totalorder %s3508_s2, %s3508_s2 }
  0x3e   :  { %p3515_p2 = por %p3514_p1, %p3513_p0 }
  0x40   :  { %p3516_p3 = pnand %p3515_p2, %p3509_p13 }
  0x42   :  { %3519 = shalt.err (!%p3516_p3)
}
  0x43   :  { %65 = dma.hbm_to_vmem [thread:$0]  %s4115_s5, 512, %s60_s17, [#allocation10], %s3551_s11, %s3551_s11, %s3552_s12  }
  0x44   :  { %3542 = dma.done.wait [#allocation4], 128  }
  0x45   :  { %3543 = vsyncadd [#allocation4], 4294967168 }
  0x46   :  { %3544 = dma.done.wait [#allocation7], 1792  }
  0x47   :  { %3545 = vsyncadd [#allocation7], 4294965504 }
  0x48   :  { %3546 = dma.done.wait [#allocation10], 512  }
  0x49   :  { %3547 = vsyncadd [#allocation10], 4294966784  ;;  %v3556_v0 = vmov 0.0|0.0   ;;  %vm3557_vm0 = vmmov 0   ;;  %v3558_v1 = vmov 0.0   ;;  %v81_v2 = vld [vmem:[#allocation8] sm:$0xff] }
  0x4a   :  { %3185 = vmatprep.subr.bf16.mxu1 %v3556_v0  ;;  %2921 = vmatprep.mubr.msk.f32.mxu1 %vm3557_vm0, %v3558_v1  ;;  %v82_v3 = vld [vmem:[#allocation8 + $0x8] sm:$0xff]  ;;  %v83_v4 = vld [vmem:[#allocation8 + $0x10] sm:$0xff]  ;;  %v84_v6 = vld [vmem:[#allocation8 + $0x18] sm:$0xff]  ;;  %vm92_vm1 = vcmask 261120   ;;  %vm261_vm2 = vcmask 122880   ;;  %vm4118_vm3 = vcmask 130048  }
  0x4b   :  { %3197 = vmatprep.subr.bf16.mxu0 %v3556_v0  ;;  %2939 = vmatprep.mubr.msk.f32.mxu0 %vm3557_vm0, %v3558_v1  ;;  %v3186_v5 = vpack.c.bf16 %v82_v3, %v81_v2  ;;  %v3189_v7 = vpack.c.bf16 %v84_v6, %v83_v4  ;;  %v170_v8 = vld [vmem:[#allocation8 + $0x20] sm:$0xff]  ;;  %v171_v9 = vld [vmem:[#allocation8 + $0x28] sm:$0xff]  ;;  %v172_v12 = vld [vmem:[#allocation8 + $0x30] sm:$0xff]  ;;  %s3560_s29 = smov 16   ;;  %s3561_s30 = smov 48   ;;  %v183_v2 = vlaneseq }
  0x4c   :  { %v80_v10 = vld [vmem:[#allocation3] sm:$0xff]  ;;  %v3671_v11 = vpack.c.bf16 %v171_v9, %v170_v8  ;;  %v173_v13 = vld [vmem:[#allocation8 + $0x38] sm:$0xff]  ;;  %v3685_v15 = vld [vmem:[%s4111_s1] sm:$0x1]  ;;  %s3559_s1 = smov 112   ;;  %s3562_s10 = smov 64  }
  0x4d   :  { %3187 = vmatpush3.bf16.msra.mxu1 %v3186_v5  ;;  %v3676_v14 = vpack.c.bf16 %v173_v13, %v172_v12  ;;  %v2739_v16 = vld [vmem:[%s4114_s4] ss:$0 sm:$0xff]  ;;  %v3698_v20 = vld [vmem:[%s4114_s4 + $0x1] sm:$0x1]  ;;  %v167_v32 = vld [vmem:[#allocation6] sm:$0xff]  ;;  %v3742_v3 = vshrl.u32 %v183_v2, 7 }
  0x4e   :  { %3188 = vmatprep.subr.bf16.mxu1 %v3556_v0  ;;  %v168_v33 = vld [vmem:[#allocation6 + $0x8] sm:$0xff]  ;;  %v177_v38 = vld [vmem:[#allocation8 + $0x40] sm:$0xff]  ;;  %v178_v39 = vld [vmem:[#allocation8 + $0x48] sm:$0xff]  ;;  %s3563_s13 = smov 96   ;;  %s3564_s14 = smov 32  }
  0x4f   :  { %v3703_v34 = vpack.c.bf16 %v168_v33, %v167_v32  ;;  %v179_v40 = vld [vmem:[#allocation8 + $0x50] sm:$0xff]  ;;  %v3718_v41 = vpack.c.bf16 %v178_v39, %v177_v38  ;;  %v180_v42 = vld [vmem:[#allocation8 + $0x58] sm:$0xff]  ;;  %v3737_v50 = vld [vmem:[%s4114_s4 + $0x2] sm:$0x1]  ;;  %v3745_v4 = vsub.s32 0, %v3742_v3  ;;  %vm464_vm4 = vcmp.eq.s32.totalorder %v3742_v3, 0 }
  0x50   :  { %v3721_v43 = vpack.c.bf16 %v180_v42, %v179_v40  ;;  %vm746_vm5 = vcmp.eq.s32.totalorder %v3742_v3, 1  ;;  %vm1028_vm6 = vcmp.eq.s32.totalorder %v3742_v3, 2  ;;  %vm1310_vm7 = vcmp.eq.s32.totalorder %v3742_v3, 3 }
  0x51   :  { %3190 = vmatpush3.bf16.msra.mxu1 %v3189_v7  ;;  %3199 = vmatpush3.bf16.msra.mxu0 %v3703_v34  ;;  %v458_v6 = vrot.slane %v3685_v15, %v3745_v4  ;;  %vm1592_vm8 = vcmp.eq.s32.totalorder %v3742_v3, 4  ;;  %vm1874_vm9 = vcmp.eq.s32.totalorder %v3742_v3, 5  ;;  %vm2156_vm10 = vcmp.eq.s32.totalorder %v3742_v3, 6 }
  0x52   :  { %3191 = vmatprep.subr.bf16.mxu1 %v3556_v0  ;;  %3206 = vmatprep.subr.bf16.mxu0 %v3556_v0  ;;  %vm2438_vm11 = vcmp.eq.s32.totalorder %v3742_v3, 7 }
  0x54   :  { %2922 = vmatmul.mubr.msk.f32.vlgmr.msra.gmra.mrb[0].mxu1 %vm92_vm1, %v80_v10 }
  0x55   :  { %3193 = vmatpush3.bf16.msra.mxu1 %v3671_v11  ;;  %2932 = vmatprep.mubr.msk.f32.mxu1 %vm3557_vm0, %v3558_v1 }
  0x56   :  { %3194 = vmatprep.subr.bf16.mxu1 %v3556_v0 }
  0x59   :  { %3196 = vmatpush3.bf16.msra.mxu1 %v3676_v14 }
  0x5a   :  { %3200 = vmatprep.subr.bf16.mxu1 %v3556_v0 }
  0x5c   :  { %2933 = vmatmul.mubr.msk.f32.vlgmr.msra.gmra.mrb[2].mxu1 %vm92_vm1, %v3685_v15 }
  0x5d   :  { %2950 = vmatprep.mubr.msk.f32.mxu1 %vm3557_vm0, %v3558_v1  ;;  %3202 = vmatpush3.bf16.msra.mxu1 %v3718_v41 }
  0x5e   :  { %3203 = vmatprep.subr.bf16.mxu1 %v3556_v0 }
  0x61   :  { %3205 = vmatpush3.bf16.msra.mxu1 %v3721_v43 }
  0x62   :  { %3212 = vmatprep.subr.bf16.mxu1 %v3556_v0 }
 0x127   :  { %v162_v17 = vpop.f32.mrb[0].mxu1 }
 0x128   :  { %v163_v18 = vadd.f32 %v2739_v16, %v162_v17  ;;  %v2923_v19 = vpop.f32.mrb[1].mxu1 }
 0x12a   :  { %166 = vst [vmem:[#allocation2] sm:$0xff] %v163_v18 }
 0x12f   :  { %v256_v21 = vpop.f32.mrb[2].mxu1 }
 0x130   :  { %v257_v22 = vadd.f32 %v3698_v20, %v256_v21  ;;  %v2934_v23 = vpop.f32.mrb[3].mxu1 }
 0x131   :  { %v186_v24 = vld [vmem:[#allocation2] sm:$0x1]  ;;  %v475_v19 = vld [vmem:[#allocation2 + $0x1] sm:$0x1] }
 0x132   :  { %v260_v25 = vadd.f32 %v257_v22, %v186_v24 }
 0x134   :  { %v262_v26 = vsel %vm261_vm2, %v260_v25, -inf }
 0x135   :  { %263 = vmax.xlane.f32.xlu0 %v262_v26 }
 0x1c2   :  { %v264_v27 = vpop.xlane.xlu0 %263 }
 0x1c3   :  { %v265_v28 = vsub.f32 %v260_v25, %v264_v27 }
 0x1c5   :  { %v266_v29 = vmul.f32 1.442695, %v265_v28 }
 0x1c7   :  { %3346 = vpow2.f32 %v266_v29 }
 0x1d1   :  { %v3347_v30 = vpop.eup %3346 }
 0x1d2   :  { %v268_v31 = vsel %vm261_vm2, %v3347_v30, 0.0 }
 0x1d3   :  { %269 = vadd.xlane.f32.xlu0 %v268_v31 }
 0x1e9   :  { %429 = vrot.lane.b32.xlu0 %v257_v22, %s3559_s1 }
 0x260   :  { %v270_v35 = vpop.xlane.xlu0 %269 }
 0x261   :  { %3348 = vrcp.f32 %v270_v35 }
 0x264   :  { %v430_v54 = vpop.permute.xlu0 %429 }
 0x26b   :  { %v3349_v36 = vpop.eup %3348 }
 0x26c   :  { %v3708_v37 = vmul.f32 %v3349_v36, %v3347_v30 }
 0x26e   :  { %2940 = vmatmul.mubr.msk.f32.vlgmr.msra.gmra.mrb[0].mxu0 %vm4118_vm3, %v3708_v37  ;;  %v473_v30 = vrot.slane %v3708_v37, %v3745_v4 }
 0x26f   :  { %3208 = vmatpush3.bf16.msra.mxu0 %v3671_v11  ;;  %2961 = vmatprep.mubr.msk.f32.mxu0 %vm3557_vm0, %v3558_v1 }
 0x270   :  { %3209 = vmatprep.subr.bf16.mxu0 %v3556_v0  ;;  %v474_v33 = vsel %vm464_vm4, %v473_v30, 0.0 }
 0x273   :  { %3211 = vmatpush3.bf16.msra.mxu0 %v3676_v14 }
 0x274   :  { %3215 = vmatprep.subr.bf16.mxu0 %v3556_v0 }
 0x341   :  { %v343_v44 = vpop.f32.mrb[0].mxu0 }
 0x342   :  { %348 = vrot.lane.b32.xlu1 %v343_v44, %s3560_s29  ;;  %v2941_v45 = vpop.f32.mrb[1].mxu0 }
 0x3b4   :  { %v349_v46 = vpop.permute.xlu1 %348 }
 0x3b5   :  { %v351_v47 = vadd.f32 %v349_v46, %v186_v24 }
 0x3b7   :  { %v352_v48 = vmax.f32 %v351_v47, 0.0 }
 0x3b9   :  { %354 = vrot.lane.b32.xlu1 %v352_v48, %s3559_s1 }
 0x3bd   :  { %439 = vrot.lane.b32.xlu1 %v257_v22, %s3561_s30 }
 0x42b   :  { %v355_v49 = vpop.permute.xlu1 %354 }
 0x42c   :  { %2951 = vmatmul.mubr.msk.f32.vlgmr.msra.gmra.mrb[4].mxu1 %vm92_vm1, %v355_v49 }
 0x42d   :  { %3214 = vmatpush3.bf16.msra.mxu1 %v3703_v34  ;;  %2968 = vmatprep.mubr.msk.f32.mxu1 %vm3557_vm0, %v3558_v1 }
 0x42e   :  { %3221 = vmatprep.subr.bf16.mxu1 %v3556_v0 }
 0x42f   :  { %v440_v60 = vpop.permute.xlu1 %439 }
 0x4ff   :  { %v424_v51 = vpop.f32.mrb[4].mxu1 }
 0x500   :  { %v425_v52 = vadd.f32 %v3737_v50, %v424_v51  ;;  %v2952_v53 = vpop.f32.mrb[5].mxu1 }
 0x502   :  { %v432_v55 = vadd.f32 %v430_v54, %v425_v52 }
 0x504   :  { %v2746_v56 = vmul.f32 -1.442695, %v432_v55 }
 0x506   :  { %3350 = vpow2.f32 %v2746_v56 }
 0x510   :  { %v3351_v57 = vpop.eup %3350 }
 0x511   :  { %v436_v58 = vadd.f32 1.0, %v3351_v57 }
 0x513   :  { %3352 = vrcp.f32 %v436_v58 }
 0x51d   :  { %v3353_v59 = vpop.eup %3352 }
 0x51e   :  { %v442_v61 = vmul.f32 %v3353_v59, %v440_v60  ;;  %v449_v8 = vsub.f32 1.0, %v3353_v59 }
 0x520   :  { %444 = vrot.lane.b32.xlu1 %v442_v61, %s3562_s10 }
 0x592   :  { %v445_v62 = vpop.permute.xlu1 %444 }
 0x593   :  { %v447_v63 = vadd.f32 %v445_v62, %v425_v52 }
 0x595   :  { %3354 = vtanh.f32 %v447_v63 }
 0x59f   :  { %v3355_v5 = vpop.eup %3354 }
 0x5a0   :  { %451 = vrot.lane.b32.xlu1 %v3355_v5, %s3563_s13 }
 0x5a4   :  { %459 = vrot.lane.b32.xlu1 %v458_v6, %s3564_s14 }
 0x612   :  { %v452_v7 = vpop.permute.xlu1 %451 }
 0x613   :  { %v454_v10 = vmul.f32 %v452_v7, %v449_v8 }
 0x616   :  { %v460_v9 = vpop.permute.xlu1 %459 }
 0x617   :  { %v462_v12 = vmul.f32 %v3353_v59, %v460_v9  ;;  %v757_v9 = vld [vmem:[#allocation2 + $0x2] sm:$0x1] }
 0x619   :  { %v3750_v13 = vadd.f32 %v462_v12, %v454_v10 }
 0x61b   :  { %477 = vrot.lane.b32.xlu1 %v3750_v13, %s3563_s13 }
 0x68d   :  { %v478_v16 = vpop.permute.xlu1 %477 }
 0x68e   :  { %2962 = vmatmul.mubr.msk.f32.vlgmr.msra.gmra.mrb[2].mxu0 %vm92_vm1, %v478_v16 }
 0x68f   :  { %3217 = vmatpush3.bf16.msra.mxu0 %v3718_v41  ;;  %2979 = vmatprep.mubr.msk.f32.mxu0 %vm3557_vm0, %v3558_v1 }
 0x690   :  { %3218 = vmatprep.subr.bf16.mxu0 %v3556_v0 }
 0x693   :  { %3220 = vmatpush3.bf16.msra.mxu0 %v3721_v43 }
 0x694   :  { %3227 = vmatprep.subr.bf16.mxu0 %v3556_v0 }
 0x761   :  { %v547_v15 = vpop.f32.mrb[2].mxu0 }
 0x762   :  { %v548_v17 = vadd.f32 %v3698_v20, %v547_v15  ;;  %v2963_v18 = vpop.f32.mrb[3].mxu0 }
 0x764   :  { %v551_v21 = vadd.f32 %v548_v17, %v475_v19 }
 0x766   :  { %v552_v22 = vsel %vm261_vm2, %v551_v21, -inf }
 0x767   :  { %553 = vmax.xlane.f32.xlu1 %v552_v22 }
 0x7f4   :  { %v554_v23 = vpop.xlane.xlu1 %553 }
 0x7f5   :  { %v555_v24 = vsub.f32 %v551_v21, %v554_v23 }
 0x7f7   :  { %v556_v25 = vmul.f32 1.442695, %v555_v24 }
 0x7f9   :  { %3356 = vpow2.f32 %v556_v25 }
 0x803   :  { %v3357_v26 = vpop.eup %3356 }
 0x804   :  { %v558_v27 = vsel %vm261_vm2, %v3357_v26, 0.0 }
 0x805   :  { %559 = vadd.xlane.f32.xlu0 %v558_v27 }
 0x892   :  { %v560_v28 = vpop.xlane.xlu0 %559 }
 0x893   :  { %3358 = vrcp.f32 %v560_v28 }
 0x89d   :  { %v3359_v29 = vpop.eup %3358 }
 0x89e   :  { %v562_v31 = vmul.f32 %v3359_v29, %v3357_v26 }
 0x8a0   :  { %v755_v32 = vrot.slane %v562_v31, %v3745_v4  ;;  %2969 = vmatmul.mubr.msk.f32.vlgmr.msra.gmra.mrb[6].mxu1 %vm4118_vm3, %v562_v31 }
 0x8a1   :  { %3223 = vmatpush3.bf16.msra.mxu1 %v3671_v11  ;;  %2990 = vmatprep.mubr.msk.f32.mxu1 %vm3557_vm0, %v3558_v1 }
 0x8a2   :  { %v3777_v35 = vsel %vm746_vm5, %v755_v32, %v474_v33  ;;  %3224 = vmatprep.subr.bf16.mxu1 %v3556_v0 }
 0x8a5   :  { %3226 = vmatpush3.bf16.msra.mxu1 %v3676_v14 }
 0x8a6   :  { %3230 = vmatprep.subr.bf16.mxu1 %v3556_v0 }
 0x973   :  { %v632_v36 = vpop.f32.mrb[6].mxu1 }
 0x974   :  { %637 = vrot.lane.b32.xlu0 %v632_v36, %s3560_s29  ;;  %v2970_v37 = vpop.f32.mrb[7].mxu1 }
 0x978   :  { %728 = vrot.lane.b32.xlu0 %v548_v17, %s3561_s30 }
 0x9e6   :  { %v638_v38 = vpop.permute.xlu0 %637 }
 0x9e7   :  { %v640_v39 = vadd.f32 %v638_v38, %v475_v19 }
 0x9e9   :  { %v641_v40 = vmax.f32 %v640_v39, 0.0 }
 0x9ea   :  { %v729_v54 = vpop.permute.xlu0 %728 }
 0x9eb   :  { %643 = vrot.lane.b32.xlu1 %v641_v40, %s3559_s1 }
 0x9ef   :  { %718 = vrot.lane.b32.xlu1 %v548_v17, %s3559_s1 }
 0xa5d   :  { %v644_v42 = vpop.permute.xlu1 %643 }
 0xa5e   :  { %2980 = vmatmul.mubr.msk.f32.vlgmr.msra.gmra.mrb[4].mxu0 %vm92_vm1, %v644_v42 }
 0xa5f   :  { %3229 = vmatpush3.bf16.msra.mxu0 %v3703_v34  ;;  %2997 = vmatprep.mubr.msk.f32.mxu0 %vm3557_vm0, %v3558_v1 }
 0xa60   :  { %3236 = vmatprep.subr.bf16.mxu0 %v3556_v0 }
 0xa61   :  { %v719_v47 = vpop.permute.xlu1 %718 }
 0xb31   :  { %v713_v44 = vpop.f32.mrb[4].mxu0 }
 0xb32   :  { %v714_v45 = vadd.f32 %v3737_v50, %v713_v44  ;;  %v2981_v46 = vpop.f32.mrb[5].mxu0 }
 0xb34   :  { %v721_v48 = vadd.f32 %v719_v47, %v714_v45 }
 0xb36   :  { %v2750_v49 = vmul.f32 -1.442695, %v721_v48 }
 0xb38   :  { %3360 = vpow2.f32 %v2750_v49 }
 0xb42   :  { %v3361_v51 = vpop.eup %3360 }
 0xb43   :  { %v725_v52 = vadd.f32 1.0, %v3361_v51 }
 0xb45   :  { %3362 = vrcp.f32 %v725_v52 }
 0xb4f   :  { %v3363_v53 = vpop.eup %3362 }
 0xb50   :  { %v731_v55 = vmul.f32 %v3363_v53, %v729_v54  ;;  %v738_v59 = vsub.f32 1.0, %v3363_v53  ;;  %v744_v61 = vmul.f32 %v3363_v53, %v3750_v13 }
 0xb52   :  { %733 = vrot.lane.b32.xlu1 %v731_v55, %s3562_s10 }
 0xbc4   :  { %v734_v56 = vpop.permute.xlu1 %733 }
 0xbc5   :  { %v736_v57 = vadd.f32 %v734_v56, %v714_v45 }
 0xbc7   :  { %3364 = vtanh.f32 %v736_v57 }
 0xbd1   :  { %v3365_v58 = vpop.eup %3364 }
 0xbd2   :  { %740 = vrot.lane.b32.xlu0 %v3365_v58, %s3563_s13 }
 0xc44   :  { %v741_v60 = vpop.permute.xlu0 %740 }
 0xc45   :  { %v743_v62 = vmul.f32 %v741_v60, %v738_v59  ;;  %v1039_v59 = vld [vmem:[#allocation2 + $0x3] sm:$0x1] }
 0xc47   :  { %v3795_v63 = vadd.f32 %v744_v61, %v743_v62 }
 0xc49   :  { %759 = vrot.lane.b32.xlu1 %v3795_v63, %s3563_s13 }
 0xcbb   :  { %v760_v5 = vpop.permute.xlu1 %759 }
 0xcbc   :  { %2991 = vmatmul.mubr.msk.f32.vlgmr.msra.gmra.mrb[8].mxu1 %vm92_vm1, %v760_v5 }
 0xcbd   :  { %3232 = vmatpush3.bf16.msra.mxu1 %v3718_v41  ;;  %3008 = vmatprep.mubr.msk.f32.mxu1 %vm3557_vm0, %v3558_v1 }
 0xcbe   :  { %3233 = vmatprep.subr.bf16.mxu1 %v3556_v0 }
 0xcc1   :  { %3235 = vmatpush3.bf16.msra.mxu1 %v3721_v43 }
 0xcc2   :  { %3242 = vmatprep.subr.bf16.mxu1 %v3556_v0 }
 0xd8f   :  { %v829_v6 = vpop.f32.mrb[8].mxu1 }
 0xd90   :  { %v830_v7 = vadd.f32 %v3698_v20, %v829_v6  ;;  %v2992_v8 = vpop.f32.mrb[9].mxu1 }
 0xd92   :  { %v833_v10 = vadd.f32 %v830_v7, %v757_v9 }
 0xd94   :  { %v834_v12 = vsel %vm261_vm2, %v833_v10, -inf }
 0xd95   :  { %835 = vmax.xlane.f32.xlu0 %v834_v12 }
 0xe22   :  { %v836_v16 = vpop.xlane.xlu0 %835 }
 0xe23   :  { %v837_v15 = vsub.f32 %v833_v10, %v836_v16 }
 0xe25   :  { %v838_v17 = vmul.f32 1.442695, %v837_v15 }
 0xe27   :  { %3366 = vpow2.f32 %v838_v17 }
 0xe31   :  { %v3367_v18 = vpop.eup %3366 }
 0xe32   :  { %v840_v19 = vsel %vm261_vm2, %v3367_v18, 0.0 }
 0xe33   :  { %841 = vadd.xlane.f32.xlu1 %v840_v19 }
 0xec0   :  { %v842_v21 = vpop.xlane.xlu1 %841 }
 0xec1   :  { %3368 = vrcp.f32 %v842_v21 }
 0xecb   :  { %v3369_v22 = vpop.eup %3368 }
 0xecc   :  { %v844_v23 = vmul.f32 %v3369_v22, %v3367_v18 }
 0xece   :  { %v1037_v24 = vrot.slane %v844_v23, %v3745_v4  ;;  %2998 = vmatmul.mubr.msk.f32.vlgmr.msra.gmra.mrb[6].mxu0 %vm4118_vm3, %v844_v23 }
 0xecf   :  { %3238 = vmatpush3.bf16.msra.mxu0 %v3671_v11  ;;  %3019 = vmatprep.mubr.msk.f32.mxu0 %vm3557_vm0, %v3558_v1 }
 0xed0   :  { %v3818_v25 = vsel %vm1028_vm6, %v1037_v24, %v3777_v35  ;;  %3239 = vmatprep.subr.bf16.mxu0 %v3556_v0 }
 0xed3   :  { %3241 = vmatpush3.bf16.msra.mxu0 %v3676_v14 }
 0xed4   :  { %3245 = vmatprep.subr.bf16.mxu0 %v3556_v0 }
 0xfa1   :  { %v914_v26 = vpop.f32.mrb[6].mxu0 }
 0xfa2   :  { %919 = vrot.lane.b32.xlu0 %v914_v26, %s3560_s29  ;;  %v2999_v27 = vpop.f32.mrb[7].mxu0 }
 0xfa6   :  { %1000 = vrot.lane.b32.xlu0 %v830_v7, %s3559_s1 }
0x1014   :  { %v920_v28 = vpop.permute.xlu0 %919 }
0x1015   :  { %v922_v29 = vadd.f32 %v920_v28, %v757_v9 }
0x1017   :  { %v923_v30 = vmax.f32 %v922_v29, 0.0 }
0x1018   :  { %v1001_v36 = vpop.permute.xlu0 %1000 }
0x1019   :  { %925 = vrot.lane.b32.xlu1 %v923_v30, %s3559_s1 }
0x101d   :  { %1010 = vrot.lane.b32.xlu1 %v830_v7, %s3561_s30 }
0x108b   :  { %v926_v31 = vpop.permute.xlu1 %925 }
0x108c   :  { %3009 = vmatmul.mubr.msk.f32.vlgmr.msra.gmra.mrb[10].mxu1 %vm92_vm1, %v926_v31 }
0x108d   :  { %3244 = vmatpush3.bf16.msra.mxu1 %v3703_v34  ;;  %3026 = vmatprep.mubr.msk.f32.mxu1 %vm3557_vm0, %v3558_v1 }
0x108e   :  { %3251 = vmatprep.subr.bf16.mxu1 %v3556_v0 }
0x108f   :  { %v1011_v44 = vpop.permute.xlu1 %1010 }
0x115f   :  { %v995_v32 = vpop.f32.mrb[10].mxu1 }
0x1160   :  { %v996_v33 = vadd.f32 %v3737_v50, %v995_v32  ;;  %v3010_v35 = vpop.f32.mrb[11].mxu1 }
0x1162   :  { %v1003_v37 = vadd.f32 %v1001_v36, %v996_v33 }
0x1164   :  { %v2754_v38 = vmul.f32 -1.442695, %v1003_v37 }
0x1166   :  { %3370 = vpow2.f32 %v2754_v38 }
0x1170   :  { %v3371_v39 = vpop.eup %3370 }
0x1171   :  { %v1007_v40 = vadd.f32 1.0, %v3371_v39 }
0x1173   :  { %3372 = vrcp.f32 %v1007_v40 }
0x117d   :  { %v3373_v42 = vpop.eup %3372 }
0x117e   :  { %v1013_v45 = vmul.f32 %v3373_v42, %v1011_v44  ;;  %v1020_v49 = vsub.f32 1.0, %v3373_v42  ;;  %v1026_v52 = vmul.f32 %v3373_v42, %v3795_v63 }
0x1180   :  { %1015 = vrot.lane.b32.xlu0 %v1013_v45, %s3562_s10 }
0x11f2   :  { %v1016_v46 = vpop.permute.xlu0 %1015 }
0x11f3   :  { %v1018_v47 = vadd.f32 %v1016_v46, %v996_v33 }
0x11f5   :  { %3374 = vtanh.f32 %v1018_v47 }
0x11ff   :  { %v3375_v48 = vpop.eup %3374 }
0x1200   :  { %1022 = vrot.lane.b32.xlu1 %v3375_v48, %s3563_s13 }
0x1272   :  { %v1023_v51 = vpop.permute.xlu1 %1022 }
0x1273   :  { %v1025_v53 = vmul.f32 %v1023_v51, %v1020_v49  ;;  %v1321_v51 = vld [vmem:[#allocation2 + $0x4] sm:$0x1] }
0x1275   :  { %v3836_v54 = vadd.f32 %v1026_v52, %v1025_v53 }
0x1277   :  { %1041 = vrot.lane.b32.xlu0 %v3836_v54, %s3563_s13 }
0x12e9   :  { %v1042_v55 = vpop.permute.xlu0 %1041 }
0x12ea   :  { %3020 = vmatmul.mubr.msk.f32.vlgmr.msra.gmra.mrb[8].mxu0 %vm92_vm1, %v1042_v55 }
0x12eb   :  { %3247 = vmatpush3.bf16.msra.mxu0 %v3718_v41  ;;  %3037 = vmatprep.mubr.msk.f32.mxu0 %vm3557_vm0, %v3558_v1 }
0x12ec   :  { %3248 = vmatprep.subr.bf16.mxu0 %v3556_v0 }
0x12ef   :  { %3250 = vmatpush3.bf16.msra.mxu0 %v3721_v43 }
0x12f0   :  { %3257 = vmatprep.subr.bf16.mxu0 %v3556_v0 }
0x13bd   :  { %v1111_v56 = vpop.f32.mrb[8].mxu0 }
0x13be   :  { %v1112_v57 = vadd.f32 %v3698_v20, %v1111_v56  ;;  %v3021_v58 = vpop.f32.mrb[9].mxu0 }
0x13c0   :  { %v1115_v60 = vadd.f32 %v1112_v57, %v1039_v59 }
0x13c2   :  { %v1116_v61 = vsel %vm261_vm2, %v1115_v60, -inf }
0x13c3   :  { %1117 = vmax.xlane.f32.xlu1 %v1116_v61 }
0x1450   :  { %v1118_v62 = vpop.xlane.xlu1 %1117 }
0x1451   :  { %v1119_v5 = vsub.f32 %v1115_v60, %v1118_v62 }
0x1453   :  { %v1120_v6 = vmul.f32 1.442695, %v1119_v5 }
0x1455   :  { %3376 = vpow2.f32 %v1120_v6 }
0x145f   :  { %v3377_v7 = vpop.eup %3376 }
0x1460   :  { %v1122_v8 = vsel %vm261_vm2, %v3377_v7, 0.0 }
0x1461   :  { %1123 = vadd.xlane.f32.xlu0 %v1122_v8 }
0x14ee   :  { %v1124_v9 = vpop.xlane.xlu0 %1123 }
0x14ef   :  { %3378 = vrcp.f32 %v1124_v9 }
0x14f9   :  { %v3379_v10 = vpop.eup %3378 }
0x14fa   :  { %v1126_v12 = vmul.f32 %v3379_v10, %v3377_v7 }
0x14fc   :  { %v1319_v16 = vrot.slane %v1126_v12, %v3745_v4  ;;  %3027 = vmatmul.mubr.msk.f32.vlgmr.msra.gmra.mrb[12].mxu1 %vm4118_vm3, %v1126_v12 }
0x14fd   :  { %3253 = vmatpush3.bf16.msra.mxu1 %v3671_v11  ;;  %3048 = vmatprep.mubr.msk.f32.mxu1 %vm3557_vm0, %v3558_v1 }
0x14fe   :  { %3254 = vmatprep.subr.bf16.mxu1 %v3556_v0  ;;  %v3860_v15 = vsel %vm1310_vm7, %v1319_v16, %v3818_v25 }
0x1501   :  { %3256 = vmatpush3.bf16.msra.mxu1 %v3676_v14 }
0x1502   :  { %3260 = vmatprep.subr.bf16.mxu1 %v3556_v0 }
0x15cf   :  { %v1196_v17 = vpop.f32.mrb[12].mxu1 }
0x15d0   :  { %1201 = vrot.lane.b32.xlu0 %v1196_v17, %s3560_s29  ;;  %v3028_v18 = vpop.f32.mrb[13].mxu1 }
0x15d4   :  { %1292 = vrot.lane.b32.xlu0 %v1112_v57, %s3561_s30 }
0x1642   :  { %v1202_v19 = vpop.permute.xlu0 %1201 }
0x1643   :  { %v1204_v21 = vadd.f32 %v1202_v19, %v1039_v59 }
0x1645   :  { %v1205_v22 = vmax.f32 %v1204_v21, 0.0 }
0x1646   :  { %v1293_v33 = vpop.permute.xlu0 %1292 }
0x1647   :  { %1207 = vrot.lane.b32.xlu1 %v1205_v22, %s3559_s1 }
0x164b   :  { %1282 = vrot.lane.b32.xlu1 %v1112_v57, %s3559_s1 }
0x16b9   :  { %v1208_v23 = vpop.permute.xlu1 %1207 }
0x16ba   :  { %3038 = vmatmul.mubr.msk.f32.vlgmr.msra.gmra.mrb[10].mxu0 %vm92_vm1, %v1208_v23 }
0x16bb   :  { %3259 = vmatpush3.bf16.msra.mxu0 %v3703_v34  ;;  %3055 = vmatprep.mubr.msk.f32.mxu0 %vm3557_vm0, %v3558_v1 }
0x16bc   :  { %3266 = vmatprep.subr.bf16.mxu0 %v3556_v0 }
0x16bd   :  { %v1283_v27 = vpop.permute.xlu1 %1282 }
0x178d   :  { %v1277_v24 = vpop.f32.mrb[10].mxu0 }
0x178e   :  { %v1278_v25 = vadd.f32 %v3737_v50, %v1277_v24  ;;  %v3039_v26 = vpop.f32.mrb[11].mxu0 }
0x1790   :  { %v1285_v28 = vadd.f32 %v1283_v27, %v1278_v25 }
0x1792   :  { %v2758_v29 = vmul.f32 -1.442695, %v1285_v28 }
0x1794   :  { %3380 = vpow2.f32 %v2758_v29 }
0x179e   :  { %v3381_v30 = vpop.eup %3380 }
0x179f   :  { %v1289_v31 = vadd.f32 1.0, %v3381_v30 }
0x17a1   :  { %3382 = vrcp.f32 %v1289_v31 }
0x17ab   :  { %v3383_v32 = vpop.eup %3382 }
0x17ac   :  { %v1295_v35 = vmul.f32 %v3383_v32, %v1293_v33  ;;  %v1302_v39 = vsub.f32 1.0, %v3383_v32  ;;  %v1308_v42 = vmul.f32 %v3383_v32, %v3836_v54 }
0x17ae   :  { %1297 = vrot.lane.b32.xlu1 %v1295_v35, %s3562_s10 }
0x1820   :  { %v1298_v36 = vpop.permute.xlu1 %1297 }
0x1821   :  { %v1300_v37 = vadd.f32 %v1298_v36, %v1278_v25 }
0x1823   :  { %3384 = vtanh.f32 %v1300_v37 }
0x182d   :  { %v3385_v38 = vpop.eup %3384 }
0x182e   :  { %1304 = vrot.lane.b32.xlu0 %v3385_v38, %s3563_s13 }
0x18a0   :  { %v1305_v40 = vpop.permute.xlu0 %1304 }
0x18a1   :  { %v1307_v44 = vmul.f32 %v1305_v40, %v1302_v39 }
0x18a3   :  { %v3877_v45 = vadd.f32 %v1308_v42, %v1307_v44  ;;  %v1603_v42 = vld [vmem:[#allocation2 + $0x5] sm:$0x1] }
0x18a5   :  { %1323 = vrot.lane.b32.xlu1 %v3877_v45, %s3563_s13 }
0x1917   :  { %v1324_v46 = vpop.permute.xlu1 %1323 }
0x1918   :  { %3049 = vmatmul.mubr.msk.f32.vlgmr.msra.gmra.mrb[14].mxu1 %vm92_vm1, %v1324_v46 }
0x1919   :  { %3262 = vmatpush3.bf16.msra.mxu1 %v3718_v41  ;;  %3066 = vmatprep.mubr.msk.f32.mxu1 %vm3557_vm0, %v3558_v1 }
0x191a   :  { %3263 = vmatprep.subr.bf16.mxu1 %v3556_v0 }
0x191d   :  { %3265 = vmatpush3.bf16.msra.mxu1 %v3721_v43 }
0x191e   :  { %3272 = vmatprep.subr.bf16.mxu1 %v3556_v0 }
0x19eb   :  { %v1393_v47 = vpop.f32.mrb[14].mxu1 }
0x19ec   :  { %v1394_v48 = vadd.f32 %v3698_v20, %v1393_v47  ;;  %v3050_v49 = vpop.f32.mrb[15].mxu1 }
0x19ee   :  { %v1397_v52 = vadd.f32 %v1394_v48, %v1321_v51 }
0x19f0   :  { %v1398_v53 = vsel %vm261_vm2, %v1397_v52, -inf }
0x19f1   :  { %1399 = vmax.xlane.f32.xlu0 %v1398_v53 }
0x1a7e   :  { %v1400_v55 = vpop.xlane.xlu0 %1399 }
0x1a7f   :  { %v1401_v56 = vsub.f32 %v1397_v52, %v1400_v55 }
0x1a81   :  { %v1402_v57 = vmul.f32 1.442695, %v1401_v56 }
0x1a83   :  { %3386 = vpow2.f32 %v1402_v57 }
0x1a8d   :  { %v3387_v58 = vpop.eup %3386 }
0x1a8e   :  { %v1404_v59 = vsel %vm261_vm2, %v3387_v58, 0.0 }
0x1a8f   :  { %1405 = vadd.xlane.f32.xlu1 %v1404_v59 }
0x1b1c   :  { %v1406_v60 = vpop.xlane.xlu1 %1405 }
0x1b1d   :  { %3388 = vrcp.f32 %v1406_v60 }
0x1b27   :  { %v3389_v61 = vpop.eup %3388 }
0x1b28   :  { %v1408_v62 = vmul.f32 %v3389_v61, %v3387_v58 }
0x1b2a   :  { %v1601_v5 = vrot.slane %v1408_v62, %v3745_v4  ;;  %3056 = vmatmul.mubr.msk.f32.vlgmr.msra.gmra.mrb[12].mxu0 %vm4118_vm3, %v1408_v62 }
0x1b2b   :  { %3268 = vmatpush3.bf16.msra.mxu0 %v3671_v11  ;;  %3077 = vmatprep.mubr.msk.f32.mxu0 %vm3557_vm0, %v3558_v1 }
0x1b2c   :  { %3269 = vmatprep.subr.bf16.mxu0 %v3556_v0  ;;  %v3901_v6 = vsel %vm1592_vm8, %v1601_v5, %v3860_v15 }
0x1b2f   :  { %3271 = vmatpush3.bf16.msra.mxu0 %v3676_v14 }
0x1b30   :  { %3275 = vmatprep.subr.bf16.mxu0 %v3556_v0 }
0x1bfd   :  { %v1478_v7 = vpop.f32.mrb[12].mxu0 }
0x1bfe   :  { %1483 = vrot.lane.b32.xlu0 %v1478_v7, %s3560_s29  ;;  %v3057_v8 = vpop.f32.mrb[13].mxu0 }
0x1c02   :  { %1564 = vrot.lane.b32.xlu0 %v1394_v48, %s3559_s1 }
0x1c70   :  { %v1484_v9 = vpop.permute.xlu0 %1483 }
0x1c71   :  { %v1486_v10 = vadd.f32 %v1484_v9, %v1321_v51 }
0x1c73   :  { %v1487_v12 = vmax.f32 %v1486_v10, 0.0 }
0x1c74   :  { %v1565_v19 = vpop.permute.xlu0 %1564 }
0x1c75   :  { %1489 = vrot.lane.b32.xlu1 %v1487_v12, %s3559_s1 }
0x1c79   :  { %1574 = vrot.lane.b32.xlu1 %v1394_v48, %s3561_s30 }
0x1ce7   :  { %v1490_v16 = vpop.permute.xlu1 %1489 }
0x1ce8   :  { %3067 = vmatmul.mubr.msk.f32.vlgmr.msra.gmra.mrb[16].mxu1 %vm92_vm1, %v1490_v16 }
0x1ce9   :  { %3274 = vmatpush3.bf16.msra.mxu1 %v3703_v34  ;;  %3084 = vmatprep.mubr.msk.f32.mxu1 %vm3557_vm0, %v3558_v1 }
0x1cea   :  { %3281 = vmatprep.subr.bf16.mxu1 %v3556_v0 }
0x1ceb   :  { %v1575_v26 = vpop.permute.xlu1 %1574 }
0x1dbb   :  { %v1559_v15 = vpop.f32.mrb[16].mxu1 }
0x1dbc   :  { %v1560_v17 = vadd.f32 %v3737_v50, %v1559_v15  ;;  %v3068_v18 = vpop.f32.mrb[17].mxu1 }
0x1dbe   :  { %v1567_v21 = vadd.f32 %v1565_v19, %v1560_v17 }
0x1dc0   :  { %v2762_v22 = vmul.f32 -1.442695, %v1567_v21 }
0x1dc2   :  { %3390 = vpow2.f32 %v2762_v22 }
0x1dcc   :  { %v3391_v23 = vpop.eup %3390 }
0x1dcd   :  { %v1571_v24 = vadd.f32 1.0, %v3391_v23 }
0x1dcf   :  { %3392 = vrcp.f32 %v1571_v24 }
0x1dd9   :  { %v3393_v25 = vpop.eup %3392 }
0x1dda   :  { %v1577_v27 = vmul.f32 %v3393_v25, %v1575_v26  ;;  %v1584_v31 = vsub.f32 1.0, %v3393_v25  ;;  %v1590_v33 = vmul.f32 %v3393_v25, %v3877_v45 }
0x1ddc   :  { %1579 = vrot.lane.b32.xlu0 %v1577_v27, %s3562_s10 }
0x1e4e   :  { %v1580_v28 = vpop.permute.xlu0 %1579 }
0x1e4f   :  { %v1582_v29 = vadd.f32 %v1580_v28, %v1560_v17 }
0x1e51   :  { %3394 = vtanh.f32 %v1582_v29 }
0x1e5b   :  { %v3395_v30 = vpop.eup %3394 }
0x1e5c   :  { %1586 = vrot.lane.b32.xlu1 %v3395_v30, %s3563_s13 }
0x1ece   :  { %v1587_v32 = vpop.permute.xlu1 %1586 }
0x1ecf   :  { %v1589_v35 = vmul.f32 %v1587_v32, %v1584_v31 }
0x1ed1   :  { %v3918_v36 = vadd.f32 %v1590_v33, %v1589_v35  ;;  %v1885_v35 = vld [vmem:[#allocation2 + $0x6] sm:$0x1] }
0x1ed3   :  { %1605 = vrot.lane.b32.xlu0 %v3918_v36, %s3563_s13 }
0x1f45   :  { %v1606_v37 = vpop.permute.xlu0 %1605 }
0x1f46   :  { %3078 = vmatmul.mubr.msk.f32.vlgmr.msra.gmra.mrb[14].mxu0 %vm92_vm1, %v1606_v37 }
0x1f47   :  { %3277 = vmatpush3.bf16.msra.mxu0 %v3718_v41  ;;  %3095 = vmatprep.mubr.msk.f32.mxu0 %vm3557_vm0, %v3558_v1 }
0x1f48   :  { %3278 = vmatprep.subr.bf16.mxu0 %v3556_v0 }
0x1f4b   :  { %3280 = vmatpush3.bf16.msra.mxu0 %v3721_v43 }
0x1f4c   :  { %3287 = vmatprep.subr.bf16.mxu0 %v3556_v0 }
0x2019   :  { %v1675_v38 = vpop.f32.mrb[14].mxu0 }
0x201a   :  { %v1676_v39 = vadd.f32 %v3698_v20, %v1675_v38  ;;  %v3079_v40 = vpop.f32.mrb[15].mxu0 }
0x201c   :  { %v1679_v44 = vadd.f32 %v1676_v39, %v1603_v42 }
0x201e   :  { %v1680_v46 = vsel %vm261_vm2, %v1679_v44, -inf }
0x201f   :  { %1681 = vmax.xlane.f32.xlu1 %v1680_v46 }
0x20ac   :  { %v1682_v47 = vpop.xlane.xlu1 %1681 }
0x20ad   :  { %v1683_v48 = vsub.f32 %v1679_v44, %v1682_v47 }
0x20af   :  { %v1684_v49 = vmul.f32 1.442695, %v1683_v48 }
0x20b1   :  { %3396 = vpow2.f32 %v1684_v49 }
0x20bb   :  { %v3397_v51 = vpop.eup %3396 }
0x20bc   :  { %v1686_v52 = vsel %vm261_vm2, %v3397_v51, 0.0 }
0x20bd   :  { %1687 = vadd.xlane.f32.xlu0 %v1686_v52 }
0x214a   :  { %v1688_v53 = vpop.xlane.xlu0 %1687 }
0x214b   :  { %3398 = vrcp.f32 %v1688_v53 }
0x2155   :  { %v3399_v55 = vpop.eup %3398 }
0x2156   :  { %v1690_v56 = vmul.f32 %v3399_v55, %v3397_v51 }
0x2158   :  { %v1883_v57 = vrot.slane %v1690_v56, %v3745_v4  ;;  %3085 = vmatmul.mubr.msk.f32.vlgmr.msra.gmra.mrb[18].mxu1 %vm4118_vm3, %v1690_v56 }
0x2159   :  { %3283 = vmatpush3.bf16.msra.mxu1 %v3671_v11  ;;  %3106 = vmatprep.mubr.msk.f32.mxu1 %vm3557_vm0, %v3558_v1 }
0x215a   :  { %3284 = vmatprep.subr.bf16.mxu1 %v3556_v0  ;;  %v3942_v58 = vsel %vm1874_vm9, %v1883_v57, %v3901_v6 }
0x215d   :  { %3286 = vmatpush3.bf16.msra.mxu1 %v3676_v14 }
0x215e   :  { %3290 = vmatprep.subr.bf16.mxu1 %v3556_v0 }
0x222b   :  { %v1760_v59 = vpop.f32.mrb[18].mxu1 }
0x222c   :  { %1765 = vrot.lane.b32.xlu0 %v1760_v59, %s3560_s29  ;;  %v3086_v60 = vpop.f32.mrb[19].mxu1 }
0x2230   :  { %1856 = vrot.lane.b32.xlu0 %v1676_v39, %s3561_s30 }
0x229e   :  { %v1766_v61 = vpop.permute.xlu0 %1765 }
0x229f   :  { %v1768_v62 = vadd.f32 %v1766_v61, %v1603_v42 }
0x22a1   :  { %v1769_v5 = vmax.f32 %v1768_v62, 0.0 }
0x22a2   :  { %v1857_v19 = vpop.permute.xlu0 %1856 }
0x22a3   :  { %1771 = vrot.lane.b32.xlu1 %v1769_v5, %s3559_s1 }
0x22a7   :  { %1846 = vrot.lane.b32.xlu1 %v1676_v39, %s3559_s1 }
0x2315   :  { %v1772_v7 = vpop.permute.xlu1 %1771 }
0x2316   :  { %3096 = vmatmul.mubr.msk.f32.vlgmr.msra.gmra.mrb[16].mxu0 %vm92_vm1, %v1772_v7 }
0x2317   :  { %3289 = vmatpush3.bf16.msra.mxu0 %v3703_v34  ;;  %3113 = vmatprep.mubr.msk.f32.mxu0 %vm3557_vm0, %v3558_v1 }
0x2318   :  { %3296 = vmatprep.subr.bf16.mxu0 %v3556_v0 }
0x2319   :  { %v1847_v10 = vpop.permute.xlu1 %1846 }
0x23e9   :  { %v1841_v6 = vpop.f32.mrb[16].mxu0 }
0x23ea   :  { %v1842_v8 = vadd.f32 %v3737_v50, %v1841_v6  ;;  %v3097_v9 = vpop.f32.mrb[17].mxu0 }
0x23ec   :  { %v1849_v12 = vadd.f32 %v1847_v10, %v1842_v8 }
0x23ee   :  { %v2766_v16 = vmul.f32 -1.442695, %v1849_v12 }
0x23f0   :  { %3400 = vpow2.f32 %v2766_v16 }
0x23fa   :  { %v3401_v15 = vpop.eup %3400 }
0x23fb   :  { %v1853_v17 = vadd.f32 1.0, %v3401_v15 }
0x23fd   :  { %3402 = vrcp.f32 %v1853_v17 }
0x2407   :  { %v3403_v18 = vpop.eup %3402 }
0x2408   :  { %v1859_v21 = vmul.f32 %v3403_v18, %v1857_v19  ;;  %v1866_v25 = vsub.f32 1.0, %v3403_v18  ;;  %v1872_v27 = vmul.f32 %v3403_v18, %v3918_v36 }
0x240a   :  { %1861 = vrot.lane.b32.xlu1 %v1859_v21, %s3562_s10 }
0x247c   :  { %v1862_v22 = vpop.permute.xlu1 %1861 }
0x247d   :  { %v1864_v23 = vadd.f32 %v1862_v22, %v1842_v8  ;;  %v3430_v22 = vld [vmem:[%s4114_s4 + $0x1] sm:$0x1] }
0x247f   :  { %3404 = vtanh.f32 %v1864_v23 }
0x2489   :  { %v3405_v24 = vpop.eup %3404 }
0x248a   :  { %1868 = vrot.lane.b32.xlu0 %v3405_v24, %s3563_s13 }
0x24fc   :  { %v1869_v26 = vpop.permute.xlu0 %1868 }
0x24fd   :  { %v1871_v28 = vmul.f32 %v1869_v26, %v1866_v25  ;;  %v2167_v25 = vld [vmem:[#allocation2 + $0x7] sm:$0x1] }
0x24ff   :  { %v3959_v29 = vadd.f32 %v1872_v27, %v1871_v28 }
0x2501   :  { %1887 = vrot.lane.b32.xlu1 %v3959_v29, %s3563_s13 }
0x2573   :  { %v1888_v30 = vpop.permute.xlu1 %1887 }
0x2574   :  { %3107 = vmatmul.mubr.msk.f32.vlgmr.msra.gmra.mrb[20].mxu1 %vm92_vm1, %v1888_v30 }
0x2575   :  { %3292 = vmatpush3.bf16.msra.mxu1 %v3718_v41  ;;  %3124 = vmatprep.mubr.msk.f32.mxu1 %vm3557_vm0, %v3558_v1 }
0x2576   :  { %3293 = vmatprep.subr.bf16.mxu1 %v3556_v0 }
0x2579   :  { %3295 = vmatpush3.bf16.msra.mxu1 %v3721_v43 }
0x257a   :  { %3302 = vmatprep.subr.bf16.mxu1 %v3556_v0 }
0x2647   :  { %v1957_v31 = vpop.f32.mrb[20].mxu1 }
0x2648   :  { %v1958_v32 = vadd.f32 %v3698_v20, %v1957_v31  ;;  %v3108_v33 = vpop.f32.mrb[21].mxu1 }
0x264a   :  { %v1961_v37 = vadd.f32 %v1958_v32, %v1885_v35 }
0x264c   :  { %v1962_v38 = vsel %vm261_vm2, %v1961_v37, -inf }
0x264d   :  { %1963 = vmax.xlane.f32.xlu0 %v1962_v38 }
0x26da   :  { %v1964_v39 = vpop.xlane.xlu0 %1963 }
0x26db   :  { %v1965_v40 = vsub.f32 %v1961_v37, %v1964_v39 }
0x26dd   :  { %v1966_v42 = vmul.f32 1.442695, %v1965_v40 }
0x26df   :  { %3406 = vpow2.f32 %v1966_v42 }
0x26e9   :  { %v3407_v44 = vpop.eup %3406 }
0x26ea   :  { %v1968_v46 = vsel %vm261_vm2, %v3407_v44, 0.0 }
0x26eb   :  { %1969 = vadd.xlane.f32.xlu1 %v1968_v46 }
0x2778   :  { %v1970_v47 = vpop.xlane.xlu1 %1969 }
0x2779   :  { %3408 = vrcp.f32 %v1970_v47 }
0x2783   :  { %v3409_v48 = vpop.eup %3408 }
0x2784   :  { %v1972_v49 = vmul.f32 %v3409_v48, %v3407_v44 }
0x2786   :  { %3114 = vmatmul.mubr.msk.f32.vlgmr.msra.gmra.mrb[18].mxu0 %vm4118_vm3, %v1972_v49  ;;  %v2165_v20 = vrot.slane %v1972_v49, %v3745_v4  ;;  %v3431_v49 = vld [vmem:[%s4114_s4 + $0x2] sm:$0x1] }
0x2787   :  { %3298 = vmatpush3.bf16.msra.mxu0 %v3671_v11  ;;  %3135 = vmatprep.mubr.msk.f32.mxu0 %vm3557_vm0, %v3558_v1 }
0x2788   :  { %3299 = vmatprep.subr.bf16.mxu0 %v3556_v0  ;;  %v3983_v51 = vsel %vm2156_vm10, %v2165_v20, %v3942_v58 }
0x278b   :  { %3301 = vmatpush3.bf16.msra.mxu0 %v3676_v14 }
0x278c   :  { %3305 = vmatprep.subr.bf16.mxu0 %v3556_v0 }
0x2859   :  { %v2042_v52 = vpop.f32.mrb[18].mxu0 }
0x285a   :  { %2047 = vrot.lane.b32.xlu0 %v2042_v52, %s3560_s29  ;;  %v3115_v53 = vpop.f32.mrb[19].mxu0 }
0x285e   :  { %2128 = vrot.lane.b32.xlu0 %v1958_v32, %s3559_s1 }
0x28cc   :  { %v2048_v11 = vpop.permute.xlu0 %2047 }
0x28cd   :  { %v2050_v55 = vadd.f32 %v2048_v11, %v1885_v35 }
0x28cf   :  { %v2051_v56 = vmax.f32 %v2050_v55, 0.0 }
0x28d0   :  { %v2129_v60 = vpop.permute.xlu0 %2128 }
0x28d1   :  { %2053 = vrot.lane.b32.xlu1 %v2051_v56, %s3559_s1 }
0x28d5   :  { %2138 = vrot.lane.b32.xlu1 %v1958_v32, %s3561_s30 }
0x2943   :  { %v2054_v57 = vpop.permute.xlu1 %2053 }
0x2944   :  { %3125 = vmatmul.mubr.msk.f32.vlgmr.msra.gmra.mrb[22].mxu1 %vm92_vm1, %v2054_v57 }
0x2945   :  { %3304 = vmatpush3.bf16.msra.mxu1 %v3703_v34  ;;  %3142 = vmatprep.mubr.msk.f32.mxu1 %vm3557_vm0, %v3558_v1 }
0x2946   :  { %3311 = vmatprep.subr.bf16.mxu1 %v3556_v0 }
0x2947   :  { %v2139_v8 = vpop.permute.xlu1 %2138 }
0x2a17   :  { %v2123_v14 = vpop.f32.mrb[22].mxu1 }
0x2a18   :  { %v2124_v58 = vadd.f32 %v3737_v50, %v2123_v14  ;;  %v3126_v59 = vpop.f32.mrb[23].mxu1 }
0x2a1a   :  { %v2131_v61 = vadd.f32 %v2129_v60, %v2124_v58 }
0x2a1c   :  { %v2770_v62 = vmul.f32 -1.442695, %v2131_v61  ;;  %v2449_v61 = vld [vmem:[#allocation9] sm:$0xff] }
0x2a1e   :  { %3410 = vpow2.f32 %v2770_v62  ;;  %v2450_v62 = vld [vmem:[#allocation9 + $0x8] sm:$0xff] }
0x2a28   :  { %v3411_v5 = vpop.eup %3410 }
0x2a29   :  { %v2135_v7 = vadd.f32 1.0, %v3411_v5  ;;  %v4038_v5 = vand.u32 127, %v183_v2 }
0x2a2b   :  { %3412 = vrcp.f32 %v2135_v7  ;;  %v2549_v7 = vadd.s32 8, %v3742_v3 }
0x2a35   :  { %v3413_v6 = vpop.eup %3412 }
0x2a36   :  { %v2141_v9 = vmul.f32 %v3413_v6, %v2139_v8  ;;  %v2148_v50 = vsub.f32 1.0, %v3413_v6  ;;  %v2154_v15 = vmul.f32 %v3413_v6, %v3959_v29  ;;  %v2552_v6 = vadd.s32 40, %v3742_v3  ;;  %v2451_v8 = vld [vmem:[#allocation9 + $0x10] sm:$0xff] }
0x2a38   :  { %2143 = vrot.lane.b32.xlu0 %v2141_v9, %s3562_s10  ;;  %v3312_v9 = vpack.c.bf16 %v2450_v62, %v2449_v61  ;;  %vm2556_vm12 = vcmp.eq.s32.totalorder %v4038_v5, %v2552_v6 }
0x2aaa   :  { %v2144_v34 = vpop.permute.xlu0 %2143 }
0x2aab   :  { %v2146_v10 = vadd.f32 %v2144_v34, %v2124_v58  ;;  %v2452_v34 = vld [vmem:[#allocation9 + $0x18] sm:$0xff] }
0x2aad   :  { %3414 = vtanh.f32 %v2146_v10  ;;  %v2550_v10 = vadd.s32 16, %v3742_v3 }
0x2ab7   :  { %v3415_v12 = vpop.eup %3414 }
0x2ab8   :  { %2150 = vrot.lane.b32.xlu1 %v3415_v12, %s3563_s13  ;;  %v2551_v12 = vadd.s32 24, %v3742_v3 }
0x2b2a   :  { %v2151_v16 = vpop.permute.xlu1 %2150 }
0x2b2b   :  { %v2153_v17 = vmul.f32 %v2151_v16, %v2148_v50  ;;  %v2553_v50 = vadd.s32 40, %v2549_v7  ;;  %v3315_v16 = vpack.c.bf16 %v2452_v34, %v2451_v8 }
0x2b2d   :  { %v4000_v18 = vadd.f32 %v2154_v15, %v2153_v17  ;;  %v2554_v15 = vadd.s32 40, %v2550_v10  ;;  %v2555_v17 = vadd.s32 40, %v2551_v12  ;;  %vm2557_vm13 = vcmp.eq.s32.totalorder %v4038_v5, %v2553_v50 }
0x2b2e   :  { %vm3318_vm14 = vmpackc.low %vm2557_vm13, %vm2556_vm12 }
0x2b2f   :  { %2169 = vrot.lane.b32.xlu0 %v4000_v18, %s3563_s13  ;;  %vm2558_vm15 = vcmp.eq.s32.totalorder %v4038_v5, %v2554_v15 }
0x2ba1   :  { %v2170_v19 = vpop.permute.xlu0 %2169 }
0x2ba2   :  { %3136 = vmatmul.mubr.msk.f32.vlgmr.msra.gmra.mrb[20].mxu0 %vm92_vm1, %v2170_v19  ;;  %v3565_v19 = vmov 1.0|1.0  }
0x2ba3   :  { %3307 = vmatpush3.bf16.msra.mxu0 %v3718_v41  ;;  %3153 = vmatprep.mubr.msk.f32.mxu0 %vm3557_vm0, %v3558_v1 }
0x2ba4   :  { %3308 = vmatprep.subr.bf16.mxu0 %v3556_v0 }
0x2ba7   :  { %3310 = vmatpush3.bf16.msra.mxu0 %v3721_v43 }
0x2ba8   :  { %3317 = vmatprep.subr.bf16.mxu0 %v3556_v0 }
0x2c75   :  { %v2239_v21 = vpop.f32.mrb[20].mxu0 }
0x2c76   :  { %v2240_v23 = vadd.f32 %v3430_v22, %v2239_v21  ;;  %v3137_v24 = vpop.f32.mrb[21].mxu0  ;;  %v468_v21 = vrot.slane %v3750_v13, %v3745_v4  ;;  %v750_v22 = vrot.slane %v3795_v63, %v3745_v4  ;;  %v1878_v63 = vrot.slane %v3959_v29, %v3745_v4 }
0x2c77   :  { %v1314_v24 = vrot.slane %v3877_v45, %v3745_v4 }
0x2c78   :  { %v2243_v26 = vadd.f32 %v2240_v23, %v2167_v25 }
0x2c7a   :  { %v2244_v41 = vsel %vm261_vm2, %v2243_v26, -inf }
0x2c7b   :  { %2245 = vmax.xlane.f32.xlu1 %v2244_v41  ;;  %v1596_v41 = vrot.slane %v3918_v36, %v3745_v4 }
0x2d08   :  { %v2246_v27 = vpop.xlane.xlu1 %2245 }
0x2d09   :  { %v2247_v28 = vsub.f32 %v2243_v26, %v2246_v27  ;;  %v469_v26 = vsel %vm464_vm4, %v468_v21, 0.0 }
0x2d0a   :  { %v751_v13 = vsel %vm746_vm5, %v750_v22, %v469_v26 }
0x2d0b   :  { %v2248_v30 = vmul.f32 1.442695, %v2247_v28  ;;  %v2160_v28 = vrot.slane %v4000_v18, %v3745_v4 }
0x2d0d   :  { %3416 = vpow2.f32 %v2248_v30 }
0x2d17   :  { %v3417_v31 = vpop.eup %3416 }
0x2d18   :  { %v2250_v43 = vsel %vm261_vm2, %v3417_v31, 0.0  ;;  %vm2559_vm2 = vcmp.eq.s32.totalorder %v4038_v5, %v2555_v17 }
0x2d19   :  { %2251 = vadd.xlane.f32.xlu0 %v2250_v43 }
0x2da6   :  { %v2252_v32 = vpop.xlane.xlu0 %2251 }
0x2da7   :  { %3418 = vrcp.f32 %v2252_v32 }
0x2db1   :  { %v3419_v33 = vpop.eup %3418 }
0x2db2   :  { %v2254_v35 = vmul.f32 %v3419_v33, %v3417_v31 }
0x2db4   :  { %3143 = vmatmul.mubr.msk.f32.vlgmr.msra.gmra.mrb[24].mxu1 %vm4118_vm3, %v2254_v35  ;;  %v2447_v37 = vrot.slane %v2254_v35, %v3745_v4  ;;  %vm3321_vm3 = vmpackc.low %vm2559_vm2, %vm2558_vm15  ;;  %v2569_v35 = vadd.s32 72, %v2549_v7 }
0x2db5   :  { %3164 = vmatprep.mubr.msk.f32.mxu1 %vm3557_vm0, %v3558_v1  ;;  %3313 = vmatpush3.bf16.msra.mxu1 %v3312_v9 }
0x2db6   :  { %v4024_v38 = vsel %vm2438_vm11, %v2447_v37, %v3983_v51  ;;  %3314 = vmatprep.subr.bf16.mxu1 %v3556_v0  ;;  %vm2571_vm4 = vcmp.eq.s32.totalorder %v4038_v5, %v2569_v35 }
0x2db9   :  { %3316 = vmatpush3.bf16.msra.mxu1 %v3315_v16 }
0x2e87   :  { %v2324_v39 = vpop.f32.mrb[24].mxu1 }
0x2e88   :  { %2329 = vrot.lane.b32.xlu0 %v2324_v39, %s3560_s29  ;;  %v3144_v40 = vpop.f32.mrb[25].mxu1 }
0x2e8c   :  { %2420 = vrot.lane.b32.xlu0 %v2240_v23, %s3561_s30 }
0x2efa   :  { %v2330_v42 = vpop.permute.xlu0 %2329 }
0x2efb   :  { %v2332_v44 = vadd.f32 %v2330_v42, %v2167_v25 }
0x2efd   :  { %v2333_v46 = vmax.f32 %v2332_v44, 0.0 }
0x2efe   :  { %v2421_v14 = vpop.permute.xlu0 %2420 }
0x2eff   :  { %2335 = vrot.lane.b32.xlu1 %v2333_v46, %s3559_s1 }
0x2f03   :  { %2410 = vrot.lane.b32.xlu1 %v2240_v23, %s3559_s1  ;;  %v1032_v23 = vrot.slane %v3836_v54, %v3745_v4 }
0x2f05   :  { %v1033_v45 = vsel %vm1028_vm6, %v1032_v23, %v751_v13  ;;  %vm4119_vm6 = vcmask 130048  }
0x2f06   :  { %v1315_v36 = vsel %vm1310_vm7, %v1314_v24, %v1033_v45 }
0x2f07   :  { %v1597_v31 = vsel %vm1592_vm8, %v1596_v41, %v1315_v36 }
0x2f08   :  { %v1879_v29 = vsel %vm1874_vm9, %v1878_v63, %v1597_v31 }
0x2f09   :  { %v2161_v32 = vsel %vm2156_vm10, %v2160_v28, %v1879_v29 }
0x2f71   :  { %v2336_v47 = vpop.permute.xlu1 %2335 }
0x2f72   :  { %3154 = vmatmul.mubr.msk.f32.vlgmr.msra.gmra.mrb[22].mxu0 %vm92_vm1, %v2336_v47 }
0x2f73   :  { %3175 = vmatprep.mubr.msk.f32.mxu0 %vm3557_vm0, %v3558_v1  ;;  %3319 = vmatpush3.bf16.msk.msra.mxu0 %vm3318_vm14, %v3565_v19 }
0x2f74   :  { %3320 = vmatprep.subr.bf16.mxu0 %v3556_v0 }
0x2f75   :  { %v2411_v52 = vpop.permute.xlu1 %2410 }
0x2f77   :  { %3322 = vmatpush3.bf16.msk.msra.mxu0 %vm3321_vm3, %v3565_v19 }
0x2f78   :  { %3323 = vmatprep.subr.bf16.mxu0 %v3556_v0 }
0x3045   :  { %v2405_v48 = vpop.f32.mrb[22].mxu0 }
0x3046   :  { %v2406_v20 = vadd.f32 %v3431_v49, %v2405_v48  ;;  %v3155_v51 = vpop.f32.mrb[23].mxu0 }
0x3048   :  { %v2413_v53 = vadd.f32 %v2411_v52, %v2406_v20 }
0x304a   :  { %v2774_v11 = vmul.f32 -1.442695, %v2413_v53 }
0x304c   :  { %3420 = vpow2.f32 %v2774_v11 }
0x3056   :  { %v3421_v55 = vpop.eup %3420 }
0x3057   :  { %v2417_v56 = vadd.f32 1.0, %v3421_v55 }
0x3059   :  { %3422 = vrcp.f32 %v2417_v56 }
0x3063   :  { %v3423_v57 = vpop.eup %3422 }
0x3064   :  { %v2423_v58 = vmul.f32 %v3423_v57, %v2421_v14  ;;  %v2430_v25 = vsub.f32 1.0, %v3423_v57  ;;  %v2436_v27 = vmul.f32 %v3423_v57, %v4000_v18  ;;  %v2568_v18 = vadd.s32 72, %v3742_v3  ;;  %v2775_v3 = vld [vmem:[%s4116_s6] ss:$0 sm:$0xff]  ;;  %s3566_s6 = smov [#allocation11]  }
0x3065   :  { %s2728_s20 = sshll.u32 %s3566_s6, 4  ;;  %s2729_s20 = int_to_ptr.vmem [resolvable:$true] %s2728_s20 }
0x3066   :  { %2425 = vrot.lane.b32.xlu1 %v2423_v58, %s3562_s10  ;;  %vm2570_vm3 = vcmp.eq.s32.totalorder %v4038_v5, %v2568_v18  ;;  %s3520_s21 = scalar_lea.vmem %s2729_s20, 128  ;;  %p3525_p5 = scmp.lt.s32.totalorder %s2729_s20, %s2729_s20 }
0x3067   :  { %vm3324_vm5 = vmpackc.low %vm2571_vm4, %vm2570_vm3  ;;  %p3521_p4 = scmp.ne.s32.totalorder %s2729_s20, %s3520_s21  ;;  %p3526_p6 = scmp.lt.s32.totalorder %s3520_s21, %s3520_s21 }
0x3069   :  { %p3527_p7 = por %p3526_p6, %p3525_p5 }
0x306b   :  { %p3528_p8 = pnand %p3527_p7, %p3521_p4 }
0x30d8   :  { %v2426_v59 = vpop.permute.xlu1 %2425 }
0x30d9   :  { %v2428_v60 = vadd.f32 %v2426_v59, %v2406_v20 }
0x30db   :  { %3424 = vtanh.f32 %v2428_v60 }
0x30e5   :  { %v3425_v2 = vpop.eup %3424 }
0x30e6   :  { %2432 = vrot.lane.b32.xlu0 %v3425_v2, %s3563_s13 }
0x3158   :  { %v2433_v0 = vpop.permute.xlu0 %2432 }
0x3159   :  { %v2435_v54 = vmul.f32 %v2433_v0, %v2430_v25 }
0x315b   :  { %v2437_v30 = vadd.f32 %v2436_v27, %v2435_v54 }
0x315d   :  { %v2442_v43 = vrot.slane %v2437_v30, %v3745_v4 }
0x315f   :  { %v2443_v33 = vsel %vm2438_vm11, %v2442_v43, %v2161_v32 }
0x3160   :  { %2461 = vrot.lane.b32.xlu1 %v2443_v33, %s3563_s13 }
0x31d2   :  { %v2462_v4 = vpop.permute.xlu1 %2461 }
0x31d3   :  { %3165 = vmatmul.mubr.msk.f32.vlgmr.msra.gmra.mrb[26].mxu1 %vm92_vm1, %v2462_v4  ;;  %3176 = vmatmul.mubr.msk.f32.vlgmr.msra.gmra.mrb[24].mxu0 %vm92_vm1, %v2462_v4 }
0x31d4   :  { %3325 = vmatpush3.bf16.msk.msra.mxu0 %vm3324_vm5, %v3565_v19  ;;  %3182 = vmatprep.mubr.msk.f32.mxu0 %vm3557_vm0, %v3558_v1  ;;  %vm2547_vm0 = vcmp.lt.s32.totalorder %v4038_v5, 40 }
0x31db   :  { %3183 = vmatmul.mubr.msk.f32.vlgmr.msra.gmra.mrb[24].mxu0 %vm4119_vm6, %v4024_v38 }
0x32a6   :  { %v2531_v37 = vpop.f32.mrb[26].mxu1 }
0x32a7   :  { %v2532_v39 = vadd.f32 %v2775_v3, %v2531_v37  ;;  %v3166_v40 = vpop.f32.mrb[27].mxu1 }
0x32a9   :  { %2535 = vmax.xlane.f32.xlu0 %v2532_v39 }
0x32ae   :  { %v2716_v42 = vpop.f32.mrb[24].mxu0 }
0x32af   :  { %v3184_v44 = vpop.f32.mrb[25].mxu0 }
0x3336   :  { %v2536_v46 = vpop.xlane.xlu0 %2535 }
0x3337   :  { %v2537_v47 = vsub.f32 %v2532_v39, %v2536_v46 }
0x3339   :  { %v2538_v48 = vmul.f32 1.442695, %v2537_v47 }
0x333b   :  { %3426 = vpow2.f32 %v2538_v48 }
0x3345   :  { %v3427_v49 = vpop.eup %3426 }
0x3346   :  { %2540 = vadd.xlane.f32.xlu1 %v3427_v49 }
0x33d3   :  { %v2541_v1 = vpop.xlane.xlu1 %2540 }
0x33d4   :  { %3428 = vlog2.f32 %v2541_v1 }
0x33de   :  { %v3429_v20 = vpop.eup %3428 }
0x33df   :  { %v2543_v38 = vmul.f32 0.6931472, %v3429_v20 }
0x33e1   :  { %v2544_v51 = vsub.f32 %v2537_v47, %v2543_v38 }
0x33e3   :  { %v2548_v52 = vsel %vm2547_vm0, %v2544_v51, 0.0 }
0x33e4   :  { %v3326_v53 = vadd.f32 %v2716_v42, %v2548_v52 }
0x33e6   :  { %2721 = vst [vmem:[#allocation11] sm:$0xff] %v3326_v53 }
0x33e7   :  { %3531 = shalt.err (!%p3528_p8)
}
0x33e8   :  { %s3532_s24 = scalar_lea.hbm %s4117_s7, 128 }
0x33e9   :  { %p3533_p9 = scmp.ne.s32.totalorder %s4117_s7, %s3532_s24  ;;  %p3536_p10 = scmp.lt.u32.totalorder %s3532_s24, %s4117_s7 }
0x33eb   :  { %p3538_p11 = pnand %p3536_p10, %p3533_p9 }
0x33ed   :  { %3541 = shalt.err (!%p3538_p11)
}
0x33ee   :  { %2731 = dma.vmem_to_hbm [thread:$0]  %s2729_s20, 128, %s4117_s7, [#allocation5]  }
0x33ef   :  { %3548 = dma.done.wait [#allocation5], 128  }
0x33f0   :  { %3549 = vsyncadd [#allocation5], 4294967168 }
0x33f1   :  { %2735 = vsyncpa [#allocation4], 1 }
0x33f2   :  { %2736 = vsyncpa [#allocation7], 1 }
0x33f3   :  { %2737 = vsyncpa [#allocation10], 1 }
0x33f4   :  { %2738 = vsyncpa [#allocation5], 1 }

</bundles_post_ra>
